<compile_context>
chip_gen: v7x
topology: tpu7x:2x2x1
jax: 0.10.0
libtpu: 0.0.40
codegen_flags: <defaults>
</compile_context>

<pallas_src>
import jax
import jax.numpy as jnp
import numpy as np
from jax.experimental import pallas as pl
from jax.experimental.pallas import tpu as pltpu


# ---------------------------------------------------------------------------
# Kernel
# ---------------------------------------------------------------------------
def _graph_reasoning_kernel(x_ref, wqk_ref, bqk_ref, wg_ref, bg_ref, o_ref):
    tb, L, D = x_ref.shape
    # Activations arrive in bf16 (wrapper casts); accumulate / softmax in f32.
    x3 = x_ref[...].astype(jnp.bfloat16)                      # (TB, L, D)
    x2 = x3.reshape(tb * L, D)                                # tall MXU tile

    # Fused query/key projection: one (TB*L, 2D) matmul, then slice.
    qk = jnp.dot(x2, wqk_ref[...],
                 preferred_element_type=jnp.float32) + bqk_ref[...]
    q = qk[:, :D].reshape(tb, L, D).astype(jnp.bfloat16)
    k = qk[:, D:].reshape(tb, L, D).astype(jnp.bfloat16)

    # sim_edge = softmax(q @ k^T): contract on D directly (no transpose).
    # NOTE: with L=8 these batched matmuls are lane/sublane-sparse, but their
    # FLOPs are negligible next to the three linears, so they stay batched.
    logits = jnp.einsum("bld,bmd->blm", q, k,
                        preferred_element_type=jnp.float32)
    m = jnp.max(logits, axis=-1, keepdims=True)
    e = jnp.exp(logits - m)
    denom = jnp.sum(e, axis=-1, keepdims=True)
    # approx reciprocal runs on the EUP (free slot); ~1e-3 rel. error.
    edge = e * pl.reciprocal(denom, approx=True)

    # sim_sgr = edge @ x
    sgr = jnp.einsum("blm,bmd->bld", edge.astype(jnp.bfloat16), x3,
                     preferred_element_type=jnp.float32)

    # out = relu(sgr @ Wg + bg)
    out = jnp.dot(sgr.reshape(tb * L, D).astype(jnp.bfloat16), wg_ref[...],
                  preferred_element_type=jnp.float32) + bg_ref[...]
    o_ref[...] = jnp.maximum(out, 0.0).reshape(tb, L, D).astype(o_ref.dtype)


# ---------------------------------------------------------------------------
# Device / VMEM helpers
# ---------------------------------------------------------------------------
def _device_kind():
    try:
        return jax.devices()[0].device_kind.lower()
    except Exception:
        return ""


def _has_two_tensorcores():
    # v7x has 2 TensorCores per chip; v5e/v6e run the grid serially on one TC,
    # so even-grid padding there is pure wasted DMA + compute.
    kind = _device_kind()
    return ("v7" in kind) or ("7x" in kind)


def _vmem_capacity_bytes():
    """Per-TensorCore VMEM capacity (64 MiB on v7x, 128 MiB on v5e/v6e)."""
    kind = _device_kind()
    heuristic = (64 if (("v7" in kind) or ("7x" in kind)) else 128) * 1024 * 1024
    try:
        info = pltpu.get_tpu_info()
        for name in ("vmem_capacity_bytes", "vmem_size_bytes", "vmem_bytes"):
            cap = getattr(info, name, None)
            if cap:
                return int(min(int(cap), heuristic))
    except Exception:
        pass
    return heuristic


def _per_batch_vmem_bytes(L, D, out_itemsize):
    """VMEM per batch element in one grid step: double-buffered bf16 input +
    output blocks plus the f32/bf16 temporaries (qk, q/k, logits, exp, edge,
    sgr, pre-ReLU out) that are live in the fully unrolled kernel body."""
    io = 2 * L * D * (2 + out_itemsize)          # 2-deep pipeline buffers
    inter = 24 * L * D + 14 * L * L              # in-kernel intermediates
    return int(io + inter)


# ---------------------------------------------------------------------------
# Wrapper
# ---------------------------------------------------------------------------
def fuse_graph_params(wq, bq, wk, bk, wg, bg):
    """Fuse/cast the weights once, outside the per-call hot path: Wq|Wk as a
    single (D, 2D) bf16 matrix, Wg bf16, biases f32 (row vectors)."""
    D = wq.shape[0]
    wqk = jnp.concatenate([wq, wk], axis=1).astype(jnp.bfloat16)
    bqk = jnp.concatenate([bq.reshape(1, D), bk.reshape(1, D)],
                          axis=1).astype(jnp.float32)
    return (wqk, bqk, wg.astype(jnp.bfloat16),
            bg.reshape(1, D).astype(jnp.float32))


def _build_graph_call(tb, L, D, num_blocks, b_pad, out_dtype, vmem_limit,
                      cost, *, single_buffer_weights):
    # Constant-index weights/biases don't need a second pipeline buffer.
    wmode = {"pipeline_mode": pl.Buffered(1)} if single_buffer_weights else {}
    grid_spec = pltpu.PrefetchScalarGridSpec(
        num_scalar_prefetch=0,
        grid=(num_blocks,),
        in_specs=[
            pl.BlockSpec((tb, L, D), lambda b: (b, 0, 0)),          # sim_emb
            pl.BlockSpec((D, 2 * D), lambda b: (0, 0), **wmode),    # Wq|Wk
            pl.BlockSpec((1, 2 * D), lambda b: (0, 0), **wmode),    # bq|bk
            pl.BlockSpec((D, D), lambda b: (0, 0), **wmode),        # Wg
            pl.BlockSpec((1, D), lambda b: (0, 0), **wmode),        # bg
        ],
        out_specs=pl.BlockSpec((tb, L, D), lambda b: (b, 0, 0)),
    )
    return pl.pallas_call(
        _graph_reasoning_kernel,
        out_shape=jax.ShapeDtypeStruct((b_pad, L, D), out_dtype),
        grid_spec=grid_spec,
        compiler_params=pltpu.CompilerParams(
            dimension_semantics=("parallel",),
            vmem_limit_bytes=int(vmem_limit)),
        cost_estimate=cost,
    )


def graph_reasoning(sim_emb, params, *, block_batch=None, out_dtype=None,
                    target_rows=1024, single_buffer_weights=True):
    """relu( softmax((x Wq + bq)(x Wk + bk)^T) x  Wg + bg )  per batch."""
    B, L, D = sim_emb.shape
    wqk, bqk, wg_bf, bg_f32 = params
    out_dtype = jnp.dtype(out_dtype) if out_dtype is not None else sim_emb.dtype
    out_itemsize = jnp.dtype(out_dtype).itemsize

    # bf16 activation DMA: every matmul operand is bf16 anyway, so this halves
    # the dominant HBM stream of a memory-bound kernel at no numeric cost.
    x = sim_emb.astype(jnp.bfloat16)

    # Generation-aware VMEM sizing (64 MiB/TC v7x, 128 MiB v5e/v6e).
    vmem_cap = _vmem_capacity_bytes()
    vmem_limit = min(int(0.75 * vmem_cap), vmem_cap - (8 << 20))
    weight_vmem = 2 * (wqk.size * 2 + bqk.size * 4
                       + wg_bf.size * 2 + bg_f32.size * 4)
    block_budget = max(vmem_limit - weight_vmem - (4 << 20), 4 << 20)

    per_batch = _per_batch_vmem_bytes(L, D, out_itemsize)
    tb_budget = max(1, block_budget // max(per_batch, 1))
    if block_batch is None:
        tb = max(1, int(pl.cdiv(target_rows, L)))   # ~1024 flattened rows/step
    else:
        tb = int(block_batch)
    tb = int(max(1, min(tb, tb_budget, B)))         # clamp to budget + batch

    num_blocks = int(pl.cdiv(B, tb))
    # Even grid only helps on 2-TensorCore chips (v7x).
    if _has_two_tensorcores() and num_blocks > 1 and num_blocks % 2:
        num_blocks += 1
    b_pad = num_blocks * tb
    if b_pad != B:
        x = jnp.pad(x, ((0, b_pad - B), (0, 0), (0, 0)))

    flops = (2 * b_pad * L * D * (2 * D)       # fused q/k projection
             + 2 * b_pad * L * L * D           # q @ k^T
             + 2 * b_pad * L * L * D           # edge @ x
             + 2 * b_pad * L * D * D)          # graph linear
    transcendentals = b_pad * L * L + b_pad * L
    bytes_accessed = int(b_pad * L * D * 2                   # bf16 activations
                         + b_pad * L * D * out_itemsize      # output
                         + wqk.size * 2 + bqk.size * 4
                         + wg_bf.size * 2 + bg_f32.size * 4)
    cost = pl.CostEstimate(flops=int(flops),
                           transcendentals=int(transcendentals),
                           bytes_accessed=bytes_accessed)

    call_args = (x, wqk, bqk, wg_bf, bg_f32)
    try:
        out = _build_graph_call(
            tb, L, D, num_blocks, b_pad, out_dtype, vmem_limit, cost,
            single_buffer_weights=single_buffer_weights)(*call_args)
    except Exception:
        if not single_buffer_weights:
            raise
        # pl.Buffered(1) unsupported on this jax/Mosaic version -> plain specs.
        out = _build_graph_call(
            tb, L, D, num_blocks, b_pad, out_dtype, vmem_limit, cost,
            single_buffer_weights=False)(*call_args)

    return out[:B] if b_pad != B else out


# ---------------------------------------------------------------------------
# Reference + init
# ---------------------------------------------------------------------------
def init_linear_params(key, in_features, out_features):
    # PyTorch init: W ~ U(-r, r), r = sqrt(6)/sqrt(in+out); bias = 0.
    # Stored as (in, out) so the kernel computes x @ W (== PyTorch x @ W.T).
    r = np.sqrt(6.0) / np.sqrt(in_features + out_features)
    w = jax.random.uniform(key, (in_features, out_features),
                           dtype=jnp.float32, minval=-r, maxval=r)
    b = jnp.zeros((out_features,), dtype=jnp.float32)
    return w, b


def reference_graph_reasoning(x, wq, bq, wk, bk, wg, bg):
    """Pure-JAX reference mirroring the kernel's bf16-operand / f32-accumulate
    numerics (module math; operands quantized at the same points)."""
    D = x.shape[-1]
    bf = jnp.bfloat16
    xb = x.astype(bf)
    wqk = jnp.concatenate([wq, wk], axis=1).astype(bf)
    bqk = jnp.concatenate([bq, bk], axis=0).reshape(1, 1, 2 * D)
    qk = jnp.einsum("bld,de->ble", xb, wqk,
                    preferred_element_type=jnp.float32) + bqk
    q = qk[..., :D].astype(bf)
    k = qk[..., D:].astype(bf)
    logits = jnp.einsum("bld,bmd->blm", q, k,
                        preferred_element_type=jnp.float32)
    edge = jax.nn.softmax(logits, axis=-1)
    sgr = jnp.einsum("blm,bmd->bld", edge.astype(bf), xb,
                     preferred_element_type=jnp.float32)
    out = jnp.einsum("bld,de->ble", sgr.astype(bf), wg.astype(bf),
                     preferred_element_type=jnp.float32) + bg.reshape(1, 1, D)
    return jax.nn.relu(out).astype(x.dtype)


if __name__ == "__main__":
    # Small shapes consistent with the module: B=6 graphs, L=8 nodes (the
    # paper's L+1), sim_dim=128 (real model uses 256; 128 keeps the demo
    # small while staying lane-dense for output stores).
    B, L, D = 6, 8, 128

    key = jax.random.PRNGKey(0)
    k_x, k_q, k_k, k_g = jax.random.split(key, 4)

    sim_emb = jax.random.normal(k_x, (B, L, D), dtype=jnp.float32)
    wq, bq = init_linear_params(k_q, D, D)
    wk, bk = init_linear_params(k_k, D, D)
    wg, bg = init_linear_params(k_g, D, D)

    # Fuse/cast weights once, outside the per-call hot path.
    params = fuse_graph_params(wq, bq, wk, bk, wg, bg)
    ref = reference_graph_reasoning(sim_emb, wq, bq, wk, bk, wg, bg)

    # Default block-batch (whole batch in one grid step at these shapes).
    out = graph_reasoning(sim_emb, params)
    out = jax.block_until_ready(out)
    # bf16 MXU operands (f32 accumulation) -> compare with loosened tolerance.
    np.testing.assert_allclose(np.asarray(out), np.asarray(ref),
                               rtol=1e-2, atol=1e-2)

    # Multi-step grid path (exercises batch padding / block logic).
    out2 = graph_reasoning(sim_emb, params, block_batch=2)
    out2 = jax.block_until_ready(out2)
    np.testing.assert_allclose(np.asarray(out2), np.asarray(ref),
                               rtol=1e-2, atol=1e-2)

    print("KERNEL_OK")
</pallas_src>

<mosaic_0001>
module attributes {stable_mosaic.version = 11 : i64} {
  func.func @_graph_reasoning_kernel(%arg0: i32, %arg1: memref<6x8x128xbf16, #tpu.memory_space<vmem>>, %arg2: memref<128x256xbf16, #tpu.memory_space<vmem>>, %arg3: memref<1x256xf32, #tpu.memory_space<vmem>>, %arg4: memref<128x128xbf16, #tpu.memory_space<vmem>>, %arg5: memref<1x128xf32, #tpu.memory_space<vmem>>, %arg6: memref<6x8x128xf32, #tpu.memory_space<vmem>>) attributes {dimension_semantics = [#tpu.dimension_semantics<parallel>], iteration_bounds = array<i64: 1>, scalar_prefetch = 0 : i64, scratch_operands = 0 : i64, tpu.core_type = #tpu.core_type<tc>, window_params = [{transform_indices = @transform_0, window_bounds = array<i64: 6, 8, 128>}, {pipeline_mode = #tpu.pipeline_mode<synchronous>, transform_indices = @transform_1, window_bounds = array<i64: 128, 256>}, {pipeline_mode = #tpu.pipeline_mode<synchronous>, transform_indices = @transform_2, window_bounds = array<i64: 1, 256>}, {pipeline_mode = #tpu.pipeline_mode<synchronous>, transform_indices = @transform_3, window_bounds = array<i64: 128, 128>}, {pipeline_mode = #tpu.pipeline_mode<synchronous>, transform_indices = @transform_4, window_bounds = array<i64: 1, 128>}, {transform_indices = @transform_5, window_bounds = array<i64: 6, 8, 128>}]} {
    %c0 = arith.constant 0 : index
    %c0_0 = arith.constant 0 : index
    %c0_1 = arith.constant 0 : index
    %0 = vector.load %arg1[%c0, %c0_0, %c0_1] : memref<6x8x128xbf16, #tpu.memory_space<vmem>>, vector<6x8x128xbf16>
    %1 = vector.shape_cast %0 : vector<6x8x128xbf16> to vector<48x128xbf16>
    %c0_2 = arith.constant 0 : index
    %c0_3 = arith.constant 0 : index
    %2 = vector.load %arg2[%c0_2, %c0_3] : memref<128x256xbf16, #tpu.memory_space<vmem>>, vector<128x256xbf16>
    %cst = arith.constant dense<0.000000e+00> : vector<48x256xf32>
    %3 = tpu.matmul %1, %2, %cst {dimension_numbers = #tpu.dot_dimension_numbers<[1], [0], [0], [1], [0, 0, 1, 1], [], []>} : vector<48x128xbf16>, vector<128x256xbf16>, vector<48x256xf32> -> vector<48x256xf32>
    %c0_4 = arith.constant 0 : index
    %c0_5 = arith.constant 0 : index
    %4 = vector.load %arg3[%c0_4, %c0_5] : memref<1x256xf32, #tpu.memory_space<vmem>>, vector<1x256xf32>
    %5 = vector.broadcast %4 : vector<1x256xf32> to vector<48x256xf32>
    %6 = arith.addf %3, %5 : vector<48x256xf32>
    %7 = vector.extract_strided_slice %6 {offsets = [0, 0], sizes = [48, 128], strides = [1, 1]} : vector<48x256xf32> to vector<48x128xf32>
    %8 = vector.shape_cast %7 : vector<48x128xf32> to vector<6x8x128xf32>
    %9 = arith.truncf %8 : vector<6x8x128xf32> to vector<6x8x128xbf16>
    %10 = vector.extract_strided_slice %6 {offsets = [0, 128], sizes = [48, 128], strides = [1, 1]} : vector<48x256xf32> to vector<48x128xf32>
    %11 = vector.shape_cast %10 : vector<48x128xf32> to vector<6x8x128xf32>
    %12 = arith.truncf %11 : vector<6x8x128xf32> to vector<6x8x128xbf16>
    "tpu.trace_start"() <{level = 10 : i32, message = "bld,bmd->blm"}> : () -> ()
    %cst_6 = arith.constant dense<0.000000e+00> : vector<6x8x8xf32>
    %13 = tpu.matmul %9, %12, %cst_6 {dimension_numbers = #tpu.dot_dimension_numbers<[2], [2], [1], [1], [0, 0, 0, 1, 1, 1], [0], [0]>} : vector<6x8x128xbf16>, vector<6x8x128xbf16>, vector<6x8x8xf32> -> vector<6x8x8xf32>
    "tpu.trace_stop"() : () -> ()
    %cst_7 = arith.constant dense<0xFF800000> : vector<6x8xf32>
    %14 = vector.multi_reduction <maximumf>, %13, %cst_7 [2] : vector<6x8x8xf32> to vector<6x8xf32>
    %15 = vector.shape_cast %14 : vector<6x8xf32> to vector<6x8x1xf32>
    %16 = vector.broadcast %15 : vector<6x8x1xf32> to vector<6x8x8xf32>
    %17 = arith.subf %13, %16 : vector<6x8x8xf32>
    %18 = math.exp %17 : vector<6x8x8xf32>
    %cst_8 = arith.constant dense<0.000000e+00> : vector<6x8xf32>
    %19 = vector.multi_reduction <add>, %18, %cst_8 [2] : vector<6x8x8xf32> to vector<6x8xf32>
    %20 = vector.shape_cast %19 : vector<6x8xf32> to vector<6x8x1xf32>
    %21 = tpu.reciprocal %20 {approx = true} : vector<6x8x1xf32> -> vector<6x8x1xf32>
    %22 = vector.broadcast %21 : vector<6x8x1xf32> to vector<6x8x8xf32>
    %23 = arith.mulf %18, %22 : vector<6x8x8xf32>
    %24 = arith.truncf %23 : vector<6x8x8xf32> to vector<6x8x8xbf16>
    "tpu.trace_start"() <{level = 10 : i32, message = "blm,bmd->bld"}> : () -> ()
    %cst_9 = arith.constant dense<0.000000e+00> : vector<6x8x128xf32>
    %25 = tpu.matmul %24, %0, %cst_9 {dimension_numbers = #tpu.dot_dimension_numbers<[2], [1], [1], [2], [0, 0, 0, 1, 1, 2], [0], [0]>} : vector<6x8x8xbf16>, vector<6x8x128xbf16>, vector<6x8x128xf32> -> vector<6x8x128xf32>
    "tpu.trace_stop"() : () -> ()
    %26 = vector.shape_cast %25 : vector<6x8x128xf32> to vector<48x128xf32>
    %27 = arith.truncf %26 : vector<48x128xf32> to vector<48x128xbf16>
    %c0_10 = arith.constant 0 : index
    %c0_11 = arith.constant 0 : index
    %28 = vector.load %arg4[%c0_10, %c0_11] : memref<128x128xbf16, #tpu.memory_space<vmem>>, vector<128x128xbf16>
    %cst_12 = arith.constant dense<0.000000e+00> : vector<48x128xf32>
    %29 = tpu.matmul %27, %28, %cst_12 {dimension_numbers = #tpu.dot_dimension_numbers<[1], [0], [0], [1], [0, 0, 1, 1], [], []>} : vector<48x128xbf16>, vector<128x128xbf16>, vector<48x128xf32> -> vector<48x128xf32>
    %c0_13 = arith.constant 0 : index
    %c0_14 = arith.constant 0 : index
    %30 = vector.load %arg5[%c0_13, %c0_14] : memref<1x128xf32, #tpu.memory_space<vmem>>, vector<1x128xf32>
    %31 = vector.broadcast %30 : vector<1x128xf32> to vector<48x128xf32>
    %32 = arith.addf %29, %31 : vector<48x128xf32>
    %cst_15 = arith.constant 0.000000e+00 : f32
    %33 = vector.broadcast %cst_15 : f32 to vector<48x128xf32>
    %34 = arith.maximumf %32, %33 : vector<48x128xf32>
    %35 = vector.shape_cast %34 : vector<48x128xf32> to vector<6x8x128xf32>
    %c0_16 = arith.constant 0 : index
    %c0_17 = arith.constant 0 : index
    %c0_18 = arith.constant 0 : index
    %36 = vector.load %arg6[%c0_16, %c0_17, %c0_18] : memref<6x8x128xf32, #tpu.memory_space<vmem>>, vector<6x8x128xf32>
    tpu.vector_store %arg6[%c0_16, %c0_17, %c0_18], %35 {strides = array<i32>} : memref<6x8x128xf32, #tpu.memory_space<vmem>>, vector<6x8x128xf32>,
    return
  }
  func.func @transform_0(%arg0: i32) -> (i32, i32, i32) {
    %c0_i32 = arith.constant 0 : i32
    %c0_i32_0 = arith.constant 0 : i32
    %c0_i32_1 = arith.constant 0 : i32
    return %arg0, %c0_i32, %c0_i32_0 : i32, i32, i32
  }
  func.func @transform_1(%arg0: i32) -> (i32, i32) {
    %c0_i32 = arith.constant 0 : i32
    %c0_i32_0 = arith.constant 0 : i32
    %c0_i32_1 = arith.constant 0 : i32
    return %c0_i32, %c0_i32_0 : i32, i32
  }
  func.func @transform_2(%arg0: i32) -> (i32, i32) {
    %c0_i32 = arith.constant 0 : i32
    %c0_i32_0 = arith.constant 0 : i32
    %c0_i32_1 = arith.constant 0 : i32
    return %c0_i32, %c0_i32_0 : i32, i32
  }
  func.func @transform_3(%arg0: i32) -> (i32, i32) {
    %c0_i32 = arith.constant 0 : i32
    %c0_i32_0 = arith.constant 0 : i32
    %c0_i32_1 = arith.constant 0 : i32
    return %c0_i32, %c0_i32_0 : i32, i32
  }
  func.func @transform_4(%arg0: i32) -> (i32, i32) {
    %c0_i32 = arith.constant 0 : i32
    %c0_i32_0 = arith.constant 0 : i32
    %c0_i32_1 = arith.constant 0 : i32
    return %c0_i32, %c0_i32_0 : i32, i32
  }
  func.func @transform_5(%arg0: i32) -> (i32, i32, i32) {
    %c0_i32 = arith.constant 0 : i32
    %c0_i32_0 = arith.constant 0 : i32
    %c0_i32_1 = arith.constant 0 : i32
    return %arg0, %c0_i32, %c0_i32_0 : i32, i32, i32
  }
}

module attributes {stable_mosaic.version = 11 : i64} {
  func.func @_graph_reasoning_kernel(%arg0: i32, %arg1: memref<6x8x128xbf16, #tpu.memory_space<vmem>>, %arg2: memref<128x256xbf16, #tpu.memory_space<vmem>>, %arg3: memref<1x256xf32, #tpu.memory_space<vmem>>, %arg4: memref<128x128xbf16, #tpu.memory_space<vmem>>, %arg5: memref<1x128xf32, #tpu.memory_space<vmem>>, %arg6: memref<6x8x128xf32, #tpu.memory_space<vmem>>) attributes {dimension_semantics = [#tpu.dimension_semantics<parallel>], iteration_bounds = array<i64: 1>, scalar_prefetch = 0 : i64, scratch_operands = 0 : i64, tpu.core_type = #tpu.core_type<tc>, window_params = [{transform_indices = @transform_0, window_bounds = array<i64: 6, 8, 128>}, {pipeline_mode = #tpu.pipeline_mode<synchronous>, transform_indices = @transform_1, window_bounds = array<i64: 128, 256>}, {pipeline_mode = #tpu.pipeline_mode<synchronous>, transform_indices = @transform_2, window_bounds = array<i64: 1, 256>}, {pipeline_mode = #tpu.pipeline_mode<synchronous>, transform_indices = @transform_3, window_bounds = array<i64: 128, 128>}, {pipeline_mode = #tpu.pipeline_mode<synchronous>, transform_indices = @transform_4, window_bounds = array<i64: 1, 128>}, {transform_indices = @transform_5, window_bounds = array<i64: 6, 8, 128>}]} {
    %c0 = arith.constant 0 : index
    %c0_0 = arith.constant 0 : index
    %c0_1 = arith.constant 0 : index
    %0 = vector.load %arg1[%c0, %c0_0, %c0_1] : memref<6x8x128xbf16, #tpu.memory_space<vmem>>, vector<6x8x128xbf16>
    %1 = vector.shape_cast %0 : vector<6x8x128xbf16> to vector<48x128xbf16>
    %c0_2 = arith.constant 0 : index
    %c0_3 = arith.constant 0 : index
    %2 = vector.load %arg2[%c0_2, %c0_3] : memref<128x256xbf16, #tpu.memory_space<vmem>>, vector<128x256xbf16>
    %cst = arith.constant dense<0.000000e+00> : vector<48x256xf32>
    %3 = tpu.matmul %1, %2, %cst {dimension_numbers = #tpu.dot_dimension_numbers<[1], [0], [0], [1], [0, 0, 1, 1], [], []>} : vector<48x128xbf16>, vector<128x256xbf16>, vector<48x256xf32> -> vector<48x256xf32>
    %c0_4 = arith.constant 0 : index
    %c0_5 = arith.constant 0 : index
    %4 = vector.load %arg3[%c0_4, %c0_5] : memref<1x256xf32, #tpu.memory_space<vmem>>, vector<1x256xf32>
    %5 = vector.broadcast %4 : vector<1x256xf32> to vector<48x256xf32>
    %6 = arith.addf %3, %5 : vector<48x256xf32>
    %7 = vector.extract_strided_slice %6 {offsets = [0, 0], sizes = [48, 128], strides = [1, 1]} : vector<48x256xf32> to vector<48x128xf32>
    %8 = vector.shape_cast %7 : vector<48x128xf32> to vector<6x8x128xf32>
    %9 = arith.truncf %8 : vector<6x8x128xf32> to vector<6x8x128xbf16>
    %10 = vector.extract_strided_slice %6 {offsets = [0, 128], sizes = [48, 128], strides = [1, 1]} : vector<48x256xf32> to vector<48x128xf32>
    %11 = vector.shape_cast %10 : vector<48x128xf32> to vector<6x8x128xf32>
    %12 = arith.truncf %11 : vector<6x8x128xf32> to vector<6x8x128xbf16>
    "tpu.trace_start"() <{level = 10 : i32, message = "bld,bmd->blm"}> : () -> ()
    %cst_6 = arith.constant dense<0.000000e+00> : vector<6x8x8xf32>
    %13 = tpu.matmul %9, %12, %cst_6 {dimension_numbers = #tpu.dot_dimension_numbers<[2], [2], [1], [1], [0, 0, 0, 1, 1, 1], [0], [0]>} : vector<6x8x128xbf16>, vector<6x8x128xbf16>, vector<6x8x8xf32> -> vector<6x8x8xf32>
    "tpu.trace_stop"() : () -> ()
    %cst_7 = arith.constant dense<0xFF800000> : vector<6x8xf32>
    %14 = vector.multi_reduction <maximumf>, %13, %cst_7 [2] : vector<6x8x8xf32> to vector<6x8xf32>
    %15 = vector.shape_cast %14 : vector<6x8xf32> to vector<6x8x1xf32>
    %16 = vector.broadcast %15 : vector<6x8x1xf32> to vector<6x8x8xf32>
    %17 = arith.subf %13, %16 : vector<6x8x8xf32>
    %18 = math.exp %17 : vector<6x8x8xf32>
    %cst_8 = arith.constant dense<0.000000e+00> : vector<6x8xf32>
    %19 = vector.multi_reduction <add>, %18, %cst_8 [2] : vector<6x8x8xf32> to vector<6x8xf32>
    %20 = vector.shape_cast %19 : vector<6x8xf32> to vector<6x8x1xf32>
    %21 = tpu.reciprocal %20 {approx = true} : vector<6x8x1xf32> -> vector<6x8x1xf32>
    %22 = vector.broadcast %21 : vector<6x8x1xf32> to vector<6x8x8xf32>
    %23 = arith.mulf %18, %22 : vector<6x8x8xf32>
    %24 = arith.truncf %23 : vector<6x8x8xf32> to vector<6x8x8xbf16>
    "tpu.trace_start"() <{level = 10 : i32, message = "blm,bmd->bld"}> : () -> ()
    %cst_9 = arith.constant dense<0.000000e+00> : vector<6x8x128xf32>
    %25 = tpu.matmul %24, %0, %cst_9 {dimension_numbers = #tpu.dot_dimension_numbers<[2], [1], [1], [2], [0, 0, 0, 1, 1, 2], [0], [0]>} : vector<6x8x8xbf16>, vector<6x8x128xbf16>, vector<6x8x128xf32> -> vector<6x8x128xf32>
    "tpu.trace_stop"() : () -> ()
    %26 = vector.shape_cast %25 : vector<6x8x128xf32> to vector<48x128xf32>
    %27 = arith.truncf %26 : vector<48x128xf32> to vector<48x128xbf16>
    %c0_10 = arith.constant 0 : index
    %c0_11 = arith.constant 0 : index
    %28 = vector.load %arg4[%c0_10, %c0_11] : memref<128x128xbf16, #tpu.memory_space<vmem>>, vector<128x128xbf16>
    %cst_12 = arith.constant dense<0.000000e+00> : vector<48x128xf32>
    %29 = tpu.matmul %27, %28, %cst_12 {dimension_numbers = #tpu.dot_dimension_numbers<[1], [0], [0], [1], [0, 0, 1, 1], [], []>} : vector<48x128xbf16>, vector<128x128xbf16>, vector<48x128xf32> -> vector<48x128xf32>
    %c0_13 = arith.constant 0 : index
    %c0_14 = arith.constant 0 : index
    %30 = vector.load %arg5[%c0_13, %c0_14] : memref<1x128xf32, #tpu.memory_space<vmem>>, vector<1x128xf32>
    %31 = vector.broadcast %30 : vector<1x128xf32> to vector<48x128xf32>
    %32 = arith.addf %29, %31 : vector<48x128xf32>
    %cst_15 = arith.constant 0.000000e+00 : f32
    %33 = vector.broadcast %cst_15 : f32 to vector<48x128xf32>
    %34 = arith.maximumf %32, %33 : vector<48x128xf32>
    %35 = vector.shape_cast %34 : vector<48x128xf32> to vector<6x8x128xf32>
    %c0_16 = arith.constant 0 : index
    %c0_17 = arith.constant 0 : index
    %c0_18 = arith.constant 0 : index
    %36 = vector.load %arg6[%c0_16, %c0_17, %c0_18] : memref<6x8x128xf32, #tpu.memory_space<vmem>>, vector<6x8x128xf32>
    tpu.vector_store %arg6[%c0_16, %c0_17, %c0_18], %35 {strides = array<i32>} : memref<6x8x128xf32, #tpu.memory_space<vmem>>, vector<6x8x128xf32>,
    return
  }
  func.func @transform_0(%arg0: i32) -> (i32, i32, i32) {
    %c0_i32 = arith.constant 0 : i32
    %c0_i32_0 = arith.constant 0 : i32
    %c0_i32_1 = arith.constant 0 : i32
    return %arg0, %c0_i32, %c0_i32_0 : i32, i32, i32
  }
  func.func @transform_1(%arg0: i32) -> (i32, i32) {
    %c0_i32 = arith.constant 0 : i32
    %c0_i32_0 = arith.constant 0 : i32
    %c0_i32_1 = arith.constant 0 : i32
    return %c0_i32, %c0_i32_0 : i32, i32
  }
  func.func @transform_2(%arg0: i32) -> (i32, i32) {
    %c0_i32 = arith.constant 0 : i32
    %c0_i32_0 = arith.constant 0 : i32
    %c0_i32_1 = arith.constant 0 : i32
    return %c0_i32, %c0_i32_0 : i32, i32
  }
  func.func @transform_3(%arg0: i32) -> (i32, i32) {
    %c0_i32 = arith.constant 0 : i32
    %c0_i32_0 = arith.constant 0 : i32
    %c0_i32_1 = arith.constant 0 : i32
    return %c0_i32, %c0_i32_0 : i32, i32
  }
  func.func @transform_4(%arg0: i32) -> (i32, i32) {
    %c0_i32 = arith.constant 0 : i32
    %c0_i32_0 = arith.constant 0 : i32
    %c0_i32_1 = arith.constant 0 : i32
    return %c0_i32, %c0_i32_0 : i32, i32
  }
  func.func @transform_5(%arg0: i32) -> (i32, i32, i32) {
    %c0_i32 = arith.constant 0 : i32
    %c0_i32_0 = arith.constant 0 : i32
    %c0_i32_1 = arith.constant 0 : i32
    return %arg0, %c0_i32, %c0_i32_0 : i32, i32, i32
  }
}

</mosaic_0001>

<bundles_post_ra>
// kernel: tpu_custom_call.1
= control target key start
LH: loop header
LB: loop body
LE: loop exit
PB: predicated region body
PF: predicated region fallthrough
CT: control target
= control target key end

     0   :  { %10 = vsyncpa [#allocation3], 0  ;;  %s1661_s0 = inlined_call_operand.hbm [shape: bf16[6,8,128], index: 0, kind: input, shape index: {}]   ;;  %s1662_s1 = inlined_call_operand.hbm [shape: bf16[128,256], index: 1, kind: input, shape index: {}]   ;;  %s1663_s2 = inlined_call_operand.hbm [shape: f32[1,256], index: 2, kind: input, shape index: {}]   ;;  %s1664_s3 = inlined_call_operand.hbm [shape: bf16[128,128], index: 3, kind: input, shape index: {}]   ;;  %s1665_s4 = inlined_call_operand.hbm [shape: f32[1,128], index: 4, kind: input, shape index: {}]   ;;  %s1666_s5 = inlined_call_operand.hbm [shape: f32[6,8,128], index: 5, kind: output, shape index: {}]  }
   0x1   :  { %11 = vsyncpa [#allocation6], 0 }
   0x2   :  { %12 = vsyncpa [#allocation9], 0 }
   0x3   :  { %13 = vsyncpa [#allocation4], 0  ;;  %s1442_s18 = smov [#allocation5]   ;;  %s1302_s22 = scalar_lea.hbm %s1662_s1, 2048 }
   0x4   :  { %s31_s19 = sshll.u32 %s1442_s18, 4  ;;  %p1303_p0 = scmp.ne.s32.totalorder %s1662_s1, %s1302_s22  ;;  %s32_s19 = int_to_ptr.vmem [resolvable:$true] %s31_s19 }
   0x5   :  { %p1306_p1 = scmp.lt.u32.totalorder %s1302_s22, %s1662_s1 }
   0x7   :  { %p1308_p2 = pnand %p1306_p1, %p1303_p0 }
   0x9   :  { %1311 = shalt.err (!%p1308_p2)
}
   0xa   :  { %s1312_s27 = scalar_lea.vmem %s32_s19, 2048  ;;  %p1317_p4 = scmp.lt.s32.totalorder %s32_s19, %s32_s19 }
   0xb   :  { %p1313_p3 = scmp.ne.s32.totalorder %s32_s19, %s1312_s27  ;;  %p1318_p5 = scmp.lt.s32.totalorder %s1312_s27, %s1312_s27 }
   0xd   :  { %p1319_p6 = por %p1318_p5, %p1317_p4 }
   0xf   :  { %p1320_p7 = pnand %p1319_p6, %p1313_p3 }
  0x11   :  { %1323 = shalt.err (!%p1320_p7)
}
  0x12   :  { %s1443_s28 = smov 128   ;;  %s1444_s29 = smov 8  }
  0x13   :  { %37 = dma.hbm_to_vmem [thread:$0]  %s1662_s1, 2048, %s32_s19, [#allocation6], %s1443_s28, %s1443_s28, %s1444_s29  }
  0x14   :  { %s1445_s7 = smov [#allocation8]   ;;  %s1446_s9 = smov [#allocation2]  }
  0x15   :  { %s53_s8 = sshll.u32 %s1445_s7, 4  ;;  %s19_s10 = sshll.u32 %s1446_s9, 4  ;;  %s54_s8 = int_to_ptr.vmem [resolvable:$true] %s53_s8  ;;  %s20_s10 = int_to_ptr.vmem [resolvable:$true] %s19_s10 }
  0x16   :  { %s1324_s13 = scalar_lea.hbm %s1664_s3, 1024 }
  0x17   :  { %p1325_p8 = scmp.ne.s32.totalorder %s1664_s3, %s1324_s13  ;;  %p1328_p9 = scmp.lt.u32.totalorder %s1324_s13, %s1664_s3 }
  0x19   :  { %p1330_p10 = pnand %p1328_p9, %p1325_p8 }
  0x1b   :  { %1333 = shalt.err (!%p1330_p10)
}
  0x1c   :  { %s1334_s1 = scalar_lea.vmem %s54_s8, 1024  ;;  %p1339_p12 = scmp.lt.s32.totalorder %s54_s8, %s54_s8 }
  0x1d   :  { %p1335_p11 = scmp.ne.s32.totalorder %s54_s8, %s1334_s1  ;;  %p1340_p13 = scmp.lt.s32.totalorder %s1334_s1, %s1334_s1 }
  0x1f   :  { %p1341_p0 = por %p1340_p13, %p1339_p12 }
  0x21   :  { %p1342_p1 = pnand %p1341_p0, %p1335_p11 }
  0x23   :  { %1345 = shalt.err (!%p1342_p1)
}
  0x24   :  { %s1447_s18 = smov 64   ;;  %s1448_s19 = smov 4  }
  0x25   :  { %59 = dma.hbm_to_vmem [thread:$0]  %s1664_s3, 1024, %s54_s8, [#allocation9], %s1447_s18, %s1447_s18, %s1448_s19  }
  0x26   :  { %s1346_s24 = scalar_lea.hbm %s1661_s0, 384 }
  0x27   :  { %p1347_p2 = scmp.ne.s32.totalorder %s1661_s0, %s1346_s24  ;;  %p1350_p3 = scmp.lt.u32.totalorder %s1346_s24, %s1661_s0 }
  0x29   :  { %p1352_p4 = pnand %p1350_p3, %p1347_p2 }
  0x2b   :  { %1355 = shalt.err (!%p1352_p4)
}
  0x2c   :  { %s1356_s6 = scalar_lea.vmem %s20_s10, 384  ;;  %p1361_p6 = scmp.lt.s32.totalorder %s20_s10, %s20_s10 }
  0x2d   :  { %p1357_p5 = scmp.ne.s32.totalorder %s20_s10, %s1356_s6  ;;  %p1362_p7 = scmp.lt.s32.totalorder %s1356_s6, %s1356_s6 }
  0x2f   :  { %p1363_p8 = por %p1362_p7, %p1361_p6 }
  0x31   :  { %p1364_p9 = pnand %p1363_p8, %p1357_p5 }
  0x33   :  { %1367 = shalt.err (!%p1364_p9)
}
  0x34   :  { %25 = dma.hbm_to_vmem [thread:$0]  %s1661_s0, 384, %s20_s10, [#allocation3], %s1447_s18, %s1447_s18, %s1448_s19  }
  0x35   :  { %s1449_s8 = smov [#allocation7]   ;;  %s1450_s11 = smov [#allocation10]  }
  0x36   :  { %s44_s9 = sshll.u32 %s1449_s8, 4  ;;  %s66_s12 = sshll.u32 %s1450_s11, 4  ;;  %s45_s9 = int_to_ptr.vmem [resolvable:$true] %s44_s9  ;;  %s67_s12 = int_to_ptr.vmem [resolvable:$true] %s66_s12 }
  0x37   :  { %s1368_s15 = scalar_lea.hbm %s1663_s2, 32 }
  0x38   :  { %p1369_p10 = scmp.ne.s32.totalorder %s1663_s2, %s1368_s15  ;;  %p1372_p11 = scmp.lt.u32.totalorder %s1368_s15, %s1663_s2 }
  0x3a   :  { %p1374_p12 = pnand %p1372_p11, %p1369_p10 }
  0x3c   :  { %1377 = shalt.err (!%p1374_p12)
}
  0x3d   :  { %s1378_s0 = scalar_lea.vmem %s45_s9, 32  ;;  %p1383_p0 = scmp.lt.s32.totalorder %s45_s9, %s45_s9 }
  0x3e   :  { %p1379_p13 = scmp.ne.s32.totalorder %s45_s9, %s1378_s0  ;;  %p1384_p1 = scmp.lt.s32.totalorder %s1378_s0, %s1378_s0 }
  0x40   :  { %p1385_p2 = por %p1384_p1, %p1383_p0 }
  0x42   :  { %p1386_p3 = pnand %p1385_p2, %p1379_p13 }
  0x44   :  { %1389 = shalt.err (!%p1386_p3)
}
  0x45   :  { %47 = dma.hbm_to_vmem [thread:$0]  %s1663_s2, 32, %s45_s9, [#allocation6]  }
  0x46   :  { %s1390_s22 = scalar_lea.hbm %s1665_s4, 16 }
  0x47   :  { %p1391_p4 = scmp.ne.s32.totalorder %s1665_s4, %s1390_s22  ;;  %p1394_p5 = scmp.lt.u32.totalorder %s1390_s22, %s1665_s4 }
  0x49   :  { %p1396_p6 = pnand %p1394_p5, %p1391_p4 }
  0x4b   :  { %1399 = shalt.err (!%p1396_p6)
}
  0x4c   :  { %s1400_s27 = scalar_lea.vmem %s67_s12, 16  ;;  %s1404_s30 = scalar_lea.vmem %s67_s12, 32 }
  0x4d   :  { %p1401_p7 = scmp.ne.s32.totalorder %s67_s12, %s1400_s27  ;;  %p1405_p8 = scmp.lt.s32.totalorder %s67_s12, %s67_s12 }
  0x4e   :  { %p1406_p9 = scmp.lt.s32.totalorder %s1404_s30, %s1400_s27 }
  0x50   :  { %p1407_p10 = por %p1406_p9, %p1405_p8 }
  0x52   :  { %p1408_p11 = pnand %p1407_p10, %p1401_p7 }
  0x54   :  { %1411 = shalt.err (!%p1408_p11)
}
  0x55   :  { %69 = dma.hbm_to_vmem [thread:$0]  %s1665_s4, 16, %s67_s12, [#allocation9]  }
  0x56   :  { %1434 = dma.done.wait [#allocation3], 384  }
  0x57   :  { %1435 = vsyncadd [#allocation3], 4294966912 }
  0x58   :  { %1436 = dma.done.wait [#allocation6], 2080  }
  0x59   :  { %1437 = vsyncadd [#allocation6], 4294965216 }
  0x5a   :  { %1438 = dma.done.wait [#allocation9], 1040  }
  0x5b   :  { %1439 = vsyncadd [#allocation9], 4294966256  ;;  %v1451_v0 = vmov 0   ;;  %v1243_v1 = vld [vmem:[#allocation5 + $0x4] ss:$8 sps:$4 sm:$0xff]   ;;  %v1452_v26 = vmov 0.0   ;;  %v110_v27 = vlaneseq }
  0x5c   :  { %250 = vmatprep.mubr.bf16.mxu0 %v1451_v0  ;;  %260 = vmatprep.mubr.bf16.mxu1 %v1451_v0  ;;  %v1245_v2 = vld [vmem:[#allocation5] ss:$8 sps:$4 sm:$0xff]   ;;  %v1246_v3 = vld [vmem:[#allocation5 + $0x14] ss:$8 sps:$4 sm:$0xff]   ;;  %v1248_v4 = vld [vmem:[#allocation5 + $0x10] ss:$8 sps:$4 sm:$0xff]  }
  0x5d   :  { %218 = vmatprep.subr.bf16.mxu0 %v1243_v1  ;;  %1214 = vmatprep.subr.bf16.mxu1 %v1243_v1  ;;  %v1249_v5 = vld [vmem:[#allocation5 + $0x24] ss:$8 sps:$4 sm:$0xff]   ;;  %v1251_v6 = vld [vmem:[#allocation5 + $0x20] ss:$8 sps:$4 sm:$0xff]   ;;  %v1252_v7 = vld [vmem:[#allocation5 + $0x34] ss:$8 sps:$4 sm:$0xff]  }
  0x5e   :  { %219 = vmatpush1.bf16.msra.mxu0 %v1245_v2  ;;  %1222 = vmatpush1.bf16.msra.mxu1 %v1245_v2  ;;  %v1254_v8 = vld [vmem:[#allocation5 + $0x30] ss:$8 sps:$4 sm:$0xff]   ;;  %v1255_v9 = vld [vmem:[#allocation5 + $0x44] ss:$8 sps:$4 sm:$0xff]   ;;  %v1257_v10 = vld [vmem:[#allocation5 + $0x40] ss:$8 sps:$4 sm:$0xff]  }
  0x5f   :  { %220 = vmatprep.subr.bf16.mxu0 %v1246_v3  ;;  %1215 = vmatprep.subr.bf16.mxu1 %v1246_v3  ;;  %v1258_v11 = vld [vmem:[#allocation5 + $0x54] ss:$8 sps:$4 sm:$0xff]   ;;  %v1260_v12 = vld [vmem:[#allocation5 + $0x50] ss:$8 sps:$4 sm:$0xff]   ;;  %v1261_v13 = vld [vmem:[#allocation5 + $0x64] ss:$8 sps:$4 sm:$0xff]  }
  0x60   :  { %v1263_v14 = vld [vmem:[#allocation5 + $0x60] ss:$8 sps:$4 sm:$0xff]   ;;  %v1264_v15 = vld [vmem:[#allocation5 + $0x74] ss:$8 sps:$4 sm:$0xff]   ;;  %v1266_v16 = vld [vmem:[#allocation5 + $0x70] ss:$8 sps:$4 sm:$0xff]  }
  0x61   :  { %v1548_v17 = vld [vmem:[#allocation2] sm:$0xf]  ;;  %v1550_v18 = vld [vmem:[#allocation2 + $0x4] sm:$0xf]  ;;  %v1552_v19 = vld [vmem:[#allocation2 + $0x8] sm:$0xf] }
  0x62   :  { %221 = vmatpush1.bf16.msra.mxu0 %v1248_v4  ;;  %1223 = vmatpush1.bf16.msra.mxu1 %v1248_v4  ;;  %v1554_v20 = vld [vmem:[#allocation2 + $0xc] sm:$0xf]  ;;  %v1045_v21 = vcombine.low %v1548_v17, %v1550_v18  ;;  %v1560_v23 = vld [vmem:[#allocation2 + $0x10] sm:$0xf]  ;;  %v1562_v24 = vld [vmem:[#allocation2 + $0x14] sm:$0xf] }
  0x63   :  { %222 = vmatprep.subr.bf16.mxu0 %v1249_v5  ;;  %1216 = vmatprep.subr.bf16.mxu1 %v1249_v5  ;;  %v1046_v22 = vcombine.low %v1552_v19, %v1554_v20  ;;  %v1047_v25 = vcombine.low %v1560_v23, %v1562_v24  ;;  %vm1453_vm0 = vmmov 0   ;;  %v111_v28 = vshrl.u32 %v110_v27, 7  ;;  %v108_v30 = vld [vmem:[#allocation7] sm:$0x3]  ;;  %s1454_s4 = smov [#allocation11]  }
  0x64   :  { %vm533_vm1 = vcmask 64512   ;;  %vm609_vm2 = vcmask 1043456   ;;  %s1031_s3 = sshll.u32 %s1454_s4, 4  ;;  %s1032_s3 = int_to_ptr.vmem [resolvable:$true] %s1031_s3 }
  0x65   :  { %v116_v29 = vsub.s32 1, %v111_v28  ;;  %v112_v32 = vsub.s32 0, %v111_v28  ;;  %s1412_s7 = scalar_lea.vmem %s1032_s3, 768  ;;  %p1417_p13 = scmp.lt.s32.totalorder %s1032_s3, %s1032_s3 }
  0x66   :  { %223 = vmatpush1.bf16.msra.mxu0 %v1251_v6  ;;  %1224 = vmatpush1.bf16.msra.mxu1 %v1251_v6  ;;  %p1413_p12 = scmp.ne.s32.totalorder %s1032_s3, %s1412_s7  ;;  %p1418_p0 = scmp.lt.s32.totalorder %s1412_s7, %s1412_s7 }
  0x67   :  { %224 = vmatprep.subr.bf16.mxu0 %v1252_v7  ;;  %1217 = vmatprep.subr.bf16.mxu1 %v1252_v7  ;;  %v117_v31 = vrot.slane %v108_v30, %v116_v29  ;;  %v113_v40 = vrot.slane %v108_v30, %v112_v32 }
  0x68   :  { %p1419_p1 = por %p1418_p0, %p1417_p13 }
  0x6a   :  { %225 = vmatpush1.bf16.msra.mxu0 %v1254_v8  ;;  %1225 = vmatpush1.bf16.msra.mxu1 %v1254_v8  ;;  %p1420_p2 = pnand %p1419_p1, %p1413_p12 }
  0x6b   :  { %226 = vmatprep.subr.bf16.mxu0 %v1255_v9  ;;  %1218 = vmatprep.subr.bf16.mxu1 %v1255_v9 }
  0x6e   :  { %227 = vmatpush1.bf16.msra.mxu0 %v1257_v10  ;;  %1226 = vmatpush1.bf16.msra.mxu1 %v1257_v10 }
  0x6f   :  { %228 = vmatprep.subr.bf16.mxu0 %v1258_v11  ;;  %1219 = vmatprep.subr.bf16.mxu1 %v1258_v11 }
  0x72   :  { %229 = vmatpush1.bf16.msra.mxu0 %v1260_v12  ;;  %1227 = vmatpush1.bf16.msra.mxu1 %v1260_v12 }
  0x73   :  { %230 = vmatprep.subr.bf16.mxu0 %v1261_v13  ;;  %1220 = vmatprep.subr.bf16.mxu1 %v1261_v13 }
  0x76   :  { %231 = vmatpush1.bf16.msra.mxu0 %v1263_v14  ;;  %1228 = vmatpush1.bf16.msra.mxu1 %v1263_v14 }
  0x77   :  { %232 = vmatprep.subr.bf16.mxu0 %v1264_v15  ;;  %1221 = vmatprep.subr.bf16.mxu1 %v1264_v15 }
  0x7a   :  { %233 = vmatpush1.bf16.msra.mxu0 %v1266_v16  ;;  %1229 = vmatpush1.bf16.msra.mxu1 %v1266_v16 }
  0x7b   :  { %1114 = vmatprep.subr.bf16.mxu1 %v1452_v26  ;;  %1150 = vmatprep.subr.bf16.mxu0 %v1452_v26 }
  0x7d   :  { %251 = vmatmul.mubr.bf16.vlgmr.msra.gmra.mrb[0].mxu0 %v1045_v21  ;;  %261 = vmatmul.mubr.bf16.vlgmr.msra.gmra.mrb[0].mxu1 %v1046_v22 }
  0x7e   :  { %270 = vmatprep.mubr.bf16.mxu1 %v1451_v0  ;;  %1152 = vmatprep.mubr.msk.bf16.mxu0 %vm1453_vm0, %v1452_v26 }
  0x85   :  { %271 = vmatmul.mubr.bf16.gmra.mrb[4].mxu1 %v1047_v25 }
  0x86   :  { %1116 = vmatprep.mubr.msk.bf16.mxu1 %vm1453_vm0, %v1452_v26 }
 0x150   :  { %v252_v33 = vpop.f32.mrb[0].mxu0  ;;  %v262_v34 = vpop.f32.mrb[0].mxu1 }
 0x151   :  { %v254_v35 = vpop.f32.mrb[1].mxu0  ;;  %v264_v36 = vpop.f32.mrb[1].mxu1  ;;  %v253_v44 = vadd.f32 %v252_v33, %v113_v40  ;;  %v263_v56 = vadd.f32 %v262_v34, %v113_v40 }
 0x152   :  { %v255_v37 = vadd.f32 %v254_v35, %v117_v31  ;;  %v256_v38 = vpop.f32.mrb[2].mxu0  ;;  %v266_v39 = vpop.f32.mrb[2].mxu1  ;;  %v265_v52 = vadd.f32 %v264_v36, %v117_v31 }
 0x153   :  { %v258_v41 = vpop.f32.mrb[3].mxu0  ;;  %v268_v42 = vpop.f32.mrb[3].mxu1  ;;  %v281_v49 = vpack.c.bf16 %v253_v44, %v253_v44  ;;  %v257_v53 = vadd.f32 %v256_v38, %v113_v40  ;;  %v283_v58 = vpack.c.bf16 %v263_v56, %v263_v56  ;;  %v267_v61 = vadd.f32 %v266_v39, %v113_v40 }
 0x154   :  { %v287_v43 = vpack.c.bf16 %v255_v37, %v255_v37  ;;  %v259_v45 = vadd.f32 %v258_v41, %v117_v31  ;;  %v289_v54 = vpack.c.bf16 %v265_v52, %v265_v52  ;;  %v269_v57 = vadd.f32 %v268_v42, %v117_v31 }
 0x155   :  { %v282_v55 = vpack.c.bf16 %v257_v53, %v257_v53  ;;  %v284_v63 = vpack.c.bf16 %v267_v61, %v267_v61 }
 0x156   :  { %1115 = vmatpush3.bf16.xpose.msra.mxu1 %v287_v43  ;;  %v288_v51 = vpack.c.bf16 %v259_v45, %v259_v45  ;;  %v290_v59 = vpack.c.bf16 %v269_v57, %v269_v57 }
 0x157   :  { %1120 = vmatprep.subr.bf16.mxu1 %v1452_v26 }
 0x158   :  { %v272_v46 = vpop.f32.mrb[4].mxu1 }
 0x159   :  { %v274_v47 = vpop.f32.mrb[5].mxu1  ;;  %v273_v0 = vadd.f32 %v272_v46, %v113_v40 }
 0x15a   :  { %v276_v48 = vpop.f32.mrb[6].mxu1  ;;  %v275_v60 = vadd.f32 %v274_v47, %v117_v31 }
 0x15b   :  { %v278_v50 = vpop.f32.mrb[7].mxu1  ;;  %v285_v2 = vpack.c.bf16 %v273_v0, %v273_v0  ;;  %v277_v4 = vadd.f32 %v276_v48, %v113_v40 }
 0x15c   :  { %v291_v62 = vpack.c.bf16 %v275_v60, %v275_v60  ;;  %v279_v1 = vadd.f32 %v278_v50, %v117_v31 }
 0x15d   :  { %1117 = vmatmul.mubr.bf16.vlgmr.msra.gmra.mrb[8].mxu1 %v281_v49  ;;  %v286_v5 = vpack.c.bf16 %v277_v4, %v277_v4  ;;  %v611_v4 = vsel %vm609_vm2, %v1548_v17, 0 }
 0x15e   :  { %1121 = vmatpush3.bf16.xpose.msra.mxu1 %v288_v51  ;;  %1122 = vmatprep.mubr.msk.bf16.mxu1 %vm1453_vm0, %v1452_v26  ;;  %v292_v3 = vpack.c.bf16 %v279_v1, %v279_v1 }
 0x15f   :  { %1126 = vmatprep.subr.bf16.mxu1 %v1452_v26  ;;  %1151 = vmatpush3.bf16.msra.mxu0 %v611_v4 }
 0x160   :  { %1162 = vmatprep.subr.bf16.mxu0 %v1452_v26 }
 0x165   :  { %1123 = vmatmul.mubr.bf16.vlgmr.msra.gmra.mrb[12].mxu1 %v282_v55 }
 0x166   :  { %1127 = vmatpush3.bf16.xpose.msra.mxu1 %v289_v54  ;;  %1128 = vmatprep.mubr.msk.bf16.mxu1 %vm1453_vm0, %v1452_v26 }
 0x167   :  { %1132 = vmatprep.subr.bf16.mxu1 %v1452_v26 }
 0x16d   :  { %1129 = vmatmul.mubr.bf16.vlgmr.msra.gmra.mrb[16].mxu1 %v283_v58 }
 0x16e   :  { %1133 = vmatpush3.bf16.xpose.msra.mxu1 %v290_v59  ;;  %1134 = vmatprep.mubr.msk.bf16.mxu1 %vm1453_vm0, %v1452_v26 }
 0x16f   :  { %1138 = vmatprep.subr.bf16.mxu1 %v1452_v26 }
 0x175   :  { %1135 = vmatmul.mubr.bf16.vlgmr.msra.gmra.mrb[20].mxu1 %v284_v63 }
 0x176   :  { %1139 = vmatpush3.bf16.xpose.msra.mxu1 %v291_v62  ;;  %1140 = vmatprep.mubr.msk.bf16.mxu1 %vm1453_vm0, %v1452_v26 }
 0x177   :  { %1144 = vmatprep.subr.bf16.mxu1 %v1452_v26 }
 0x17d   :  { %1141 = vmatmul.mubr.bf16.vlgmr.msra.gmra.mrb[24].mxu1 %v285_v2 }
 0x17e   :  { %1145 = vmatpush3.bf16.xpose.msra.mxu1 %v292_v3  ;;  %1146 = vmatprep.mubr.msk.bf16.mxu1 %vm1453_vm0, %v1452_v26 }
 0x17f   :  { %1156 = vmatprep.subr.bf16.mxu1 %v1452_v26 }
 0x185   :  { %1147 = vmatmul.mubr.bf16.vlgmr.msra.gmra.mrb[28].mxu1 %v286_v5 }
 0x186   :  { %1158 = vmatprep.mubr.msk.bf16.mxu1 %vm1453_vm0, %v1452_v26 }
 0x230   :  { %v327_v6 = vpop.f32.mrb[8].mxu1 }
 0x231   :  { %v1118_v7 = vpop.f32.mrb[9].mxu1  ;;  %v534_v8 = vsel %vm533_vm1, %v327_v6, -inf }
 0x232   :  { %535 = vmax.xlane.f32.xlu0 %v534_v8  ;;  %v330_v9 = vpop.f32.mrb[10].mxu1  ;;  %v657_v8 = vsel %vm609_vm2, %v1550_v18, 0 }
 0x233   :  { %v1119_v10 = vpop.f32.mrb[11].mxu1  ;;  %1157 = vmatpush3.bf16.msra.mxu1 %v657_v8 }
 0x234   :  { %1168 = vmatprep.subr.bf16.mxu1 %v1452_v26 }
 0x238   :  { %v367_v11 = vpop.f32.mrb[12].mxu1 }
 0x239   :  { %v1124_v12 = vpop.f32.mrb[13].mxu1  ;;  %v537_v13 = vsel %vm533_vm1, %v367_v11, -inf }
 0x23a   :  { %538 = vmax.xlane.f32.xlu0 %v537_v13  ;;  %v370_v14 = vpop.f32.mrb[14].mxu1 }
 0x23b   :  { %v1125_v15 = vpop.f32.mrb[15].mxu1 }
 0x23c   :  { %v703_v15 = vsel %vm609_vm2, %v1552_v19, 0 }
 0x240   :  { %v407_v16 = vpop.f32.mrb[16].mxu1 }
 0x241   :  { %v1130_v21 = vpop.f32.mrb[17].mxu1  ;;  %v540_v22 = vsel %vm533_vm1, %v407_v16, -inf }
 0x242   :  { %541 = vmax.xlane.f32.xlu1 %v540_v22  ;;  %v410_v25 = vpop.f32.mrb[18].mxu1 }
 0x243   :  { %v1131_v27 = vpop.f32.mrb[19].mxu1  ;;  %v749_v25 = vsel %vm609_vm2, %v1554_v20, 0 }
 0x248   :  { %v447_v28 = vpop.f32.mrb[20].mxu1 }
 0x249   :  { %v1136_v29 = vpop.f32.mrb[21].mxu1  ;;  %v543_v30 = vsel %vm533_vm1, %v447_v28, -inf }
 0x24a   :  { %544 = vmax.xlane.f32.xlu1 %v543_v30  ;;  %v450_v31 = vpop.f32.mrb[22].mxu1  ;;  %v795_v30 = vsel %vm609_vm2, %v1560_v23, 0 }
 0x24b   :  { %v1137_v32 = vpop.f32.mrb[23].mxu1 }
 0x250   :  { %v487_v33 = vpop.f32.mrb[24].mxu1 }
 0x251   :  { %v1142_v34 = vpop.f32.mrb[25].mxu1  ;;  %v546_v35 = vsel %vm533_vm1, %v487_v33, -inf }
 0x252   :  { %547 = vmax.xlane.f32.xlu0 %v546_v35  ;;  %v490_v36 = vpop.f32.mrb[26].mxu1  ;;  %v841_v34 = vsel %vm609_vm2, %v1562_v24, 0 }
 0x253   :  { %v1143_v37 = vpop.f32.mrb[27].mxu1 }
 0x254   :  { %v1270_v37 = vld [vmem:[#allocation8] sm:$0xff]  }
 0x258   :  { %v527_v38 = vpop.f32.mrb[28].mxu1 }
 0x259   :  { %v1148_v39 = vpop.f32.mrb[29].mxu1  ;;  %v549_v40 = vsel %vm533_vm1, %v527_v38, -inf }
 0x25a   :  { %550 = vmax.xlane.f32.xlu1 %v549_v40  ;;  %v530_v41 = vpop.f32.mrb[30].mxu1  ;;  %v1271_v39 = vld [vmem:[#allocation8 + $0x8] sm:$0xff]  }
 0x25b   :  { %v1149_v42 = vpop.f32.mrb[31].mxu1  ;;  %v1272_v41 = vld [vmem:[#allocation8 + $0x10] sm:$0xff]  }
 0x2bf   :  { %v536_v43 = vpop.xlane.xlu0 %535 }
 0x2c0   :  { %v552_v44 = vsub.f32 %v327_v6, %v536_v43  ;;  %v1273_v43 = vld [vmem:[#allocation8 + $0x18] sm:$0xff]  }
 0x2c2   :  { %v558_v45 = vmul.f32 1.442695, %v552_v44  ;;  %v1274_v44 = vld [vmem:[#allocation8 + $0x20] sm:$0xff]  }
 0x2c4   :  { %1278 = vpow2.f32 %v558_v45  ;;  %v1275_v45 = vld [vmem:[#allocation8 + $0x28] sm:$0xff]  }
 0x2c7   :  { %v539_v46 = vpop.xlane.xlu0 %538 }
 0x2c8   :  { %v553_v47 = vsub.f32 %v367_v11, %v539_v46  ;;  %v1276_v46 = vld [vmem:[#allocation8 + $0x30] sm:$0xff]  }
 0x2ca   :  { %v560_v48 = vmul.f32 1.442695, %v553_v47  ;;  %v1277_v47 = vld [vmem:[#allocation8 + $0x38] sm:$0xff]  }
 0x2cc   :  { %1280 = vpow2.f32 %v560_v48 }
 0x2ce   :  { %v1279_v49 = vpop.eup %1278 }
 0x2cf   :  { %v542_v50 = vpop.xlane.xlu1 %541  ;;  %v570_v51 = vsel %vm533_vm1, %v1279_v49, 0.0 }
 0x2d0   :  { %v554_v52 = vsub.f32 %v407_v16, %v542_v50  ;;  %571 = vadd.xlane.f32.xlu0 %v570_v51 }
 0x2d2   :  { %v562_v53 = vmul.f32 1.442695, %v554_v52 }
 0x2d4   :  { %1282 = vpow2.f32 %v562_v53 }
 0x2d6   :  { %v1281_v54 = vpop.eup %1280 }
 0x2d7   :  { %v545_v55 = vpop.xlane.xlu1 %544  ;;  %v573_v56 = vsel %vm533_vm1, %v1281_v54, 0.0 }
 0x2d8   :  { %v555_v57 = vsub.f32 %v447_v28, %v545_v55  ;;  %574 = vadd.xlane.f32.xlu1 %v573_v56 }
 0x2da   :  { %v564_v58 = vmul.f32 1.442695, %v555_v57 }
 0x2dc   :  { %1284 = vpow2.f32 %v564_v58 }
 0x2de   :  { %v1283_v59 = vpop.eup %1282 }
 0x2df   :  { %v548_v60 = vpop.xlane.xlu0 %547  ;;  %v576_v61 = vsel %vm533_vm1, %v1283_v59, 0.0 }
 0x2e0   :  { %v556_v62 = vsub.f32 %v487_v33, %v548_v60  ;;  %577 = vadd.xlane.f32.xlu0 %v576_v61 }
 0x2e2   :  { %v566_v63 = vmul.f32 1.442695, %v556_v62 }
 0x2e4   :  { %1286 = vpow2.f32 %v566_v63 }
 0x2e6   :  { %v1285_v0 = vpop.eup %1284 }
 0x2e7   :  { %v551_v1 = vpop.xlane.xlu1 %550  ;;  %v579_v2 = vsel %vm533_vm1, %v1285_v0, 0.0 }
 0x2e8   :  { %v557_v3 = vsub.f32 %v527_v38, %v551_v1  ;;  %580 = vadd.xlane.f32.xlu1 %v579_v2 }
 0x2ea   :  { %v568_v5 = vmul.f32 1.442695, %v557_v3 }
 0x2ec   :  { %1288 = vpow2.f32 %v568_v5 }
 0x2ee   :  { %v1287_v6 = vpop.eup %1286 }
 0x2ef   :  { %v582_v7 = vsel %vm533_vm1, %v1287_v6, 0.0 }
 0x2f0   :  { %583 = vadd.xlane.f32.xlu0 %v582_v7 }
 0x2f6   :  { %v1289_v9 = vpop.eup %1288 }
 0x2f7   :  { %v585_v10 = vsel %vm533_vm1, %v1289_v9, 0.0 }
 0x2f8   :  { %586 = vadd.xlane.f32.xlu1 %v585_v10 }
 0x35d   :  { %v572_v17 = vpop.xlane.xlu0 %571 }
 0x35e   :  { %1290 = vrcp.f32 %v572_v17  ;;  %v1070_v17 = vld [vmem:[#allocation10] ss:$0 sm:$0xff] }
 0x365   :  { %v575_v11 = vpop.xlane.xlu1 %574 }
 0x366   :  { %1292 = vrcp.f32 %v575_v11 }
 0x368   :  { %v1291_v12 = vpop.eup %1290 }
 0x369   :  { %v594_v13 = vmul.f32 %v1291_v12, %v1279_v49 }
 0x36b   :  { %v600_v14 = vpack.c.bf16 %v594_v13, %v594_v13 }
 0x36d   :  { %1153 = vmatmul.mubr.msk.bf16.vlgmr.msra.gmra.mrb[4].mxu0 %vm533_vm1, %v600_v14  ;;  %v578_v18 = vpop.xlane.xlu0 %577 }
 0x36e   :  { %1294 = vrcp.f32 %v578_v18  ;;  %1163 = vmatpush3.bf16.msra.mxu0 %v703_v15  ;;  %1164 = vmatprep.mubr.msk.bf16.mxu0 %vm1453_vm0, %v1452_v26 }
 0x36f   :  { %1174 = vmatprep.subr.bf16.mxu0 %v1452_v26 }
 0x370   :  { %v1293_v16 = vpop.eup %1292 }
 0x371   :  { %v595_v21 = vmul.f32 %v1293_v16, %v1281_v54 }
 0x373   :  { %v601_v22 = vpack.c.bf16 %v595_v21, %v595_v21 }
 0x375   :  { %1159 = vmatmul.mubr.msk.bf16.vlgmr.msra.gmra.mrb[32].mxu1 %vm533_vm1, %v601_v22  ;;  %v581_v27 = vpop.xlane.xlu1 %580 }
 0x376   :  { %1296 = vrcp.f32 %v581_v27  ;;  %1169 = vmatpush3.bf16.msra.mxu1 %v749_v25  ;;  %1170 = vmatprep.mubr.msk.bf16.mxu1 %vm1453_vm0, %v1452_v26 }
 0x377   :  { %1180 = vmatprep.subr.bf16.mxu1 %v1452_v26 }
 0x378   :  { %v1295_v19 = vpop.eup %1294 }
 0x379   :  { %v596_v28 = vmul.f32 %v1295_v19, %v1283_v59 }
 0x37b   :  { %v602_v29 = vpack.c.bf16 %v596_v28, %v596_v28 }
 0x37d   :  { %1165 = vmatmul.mubr.msk.bf16.vlgmr.msra.gmra.mrb[8].mxu0 %vm533_vm1, %v602_v29  ;;  %v584_v31 = vpop.xlane.xlu0 %583 }
 0x37e   :  { %1298 = vrcp.f32 %v584_v31  ;;  %1175 = vmatpush3.bf16.msra.mxu0 %v795_v30  ;;  %1176 = vmatprep.mubr.msk.bf16.mxu0 %vm1453_vm0, %v1452_v26 }
 0x37f   :  { %1186 = vmatprep.subr.bf16.mxu0 %v1452_v26 }
 0x380   :  { %v1297_v20 = vpop.eup %1296 }
 0x381   :  { %v597_v32 = vmul.f32 %v1297_v20, %v1285_v0 }
 0x383   :  { %v603_v33 = vpack.c.bf16 %v597_v32, %v597_v32 }
 0x385   :  { %1171 = vmatmul.mubr.msk.bf16.vlgmr.msra.gmra.mrb[36].mxu1 %vm533_vm1, %v603_v33  ;;  %v587_v35 = vpop.xlane.xlu1 %586 }
 0x386   :  { %1300 = vrcp.f32 %v587_v35  ;;  %1181 = vmatpush3.bf16.msra.mxu1 %v841_v34  ;;  %1182 = vmatprep.mubr.msk.bf16.mxu1 %vm1453_vm0, %v1452_v26 }
 0x388   :  { %v1299_v23 = vpop.eup %1298 }
 0x389   :  { %v598_v36 = vmul.f32 %v1299_v23, %v1287_v6 }
 0x38b   :  { %v604_v38 = vpack.c.bf16 %v598_v36, %v598_v36 }
 0x38d   :  { %1177 = vmatmul.mubr.msk.bf16.vlgmr.msra.gmra.mrb[12].mxu0 %vm533_vm1, %v604_v38 }
 0x38e   :  { %1187 = vmatpush3.bf16.msra.mxu0 %v1270_v37  ;;  %1202 = vmatprep.mubr.msk.bf16.mxu0 %vm1453_vm0, %v1452_v26 }
 0x38f   :  { %1188 = vmatprep.subr.bf16.mxu0 %v1452_v26 }
 0x390   :  { %v1301_v24 = vpop.eup %1300 }
 0x391   :  { %v599_v40 = vmul.f32 %v1301_v24, %v1289_v9 }
 0x392   :  { %1189 = vmatpush3.bf16.msra.mxu0 %v1271_v39 }
 0x393   :  { %v605_v42 = vpack.c.bf16 %v599_v40, %v599_v40  ;;  %1190 = vmatprep.subr.bf16.mxu0 %v1452_v26 }
 0x395   :  { %1183 = vmatmul.mubr.msk.bf16.vlgmr.msra.gmra.mrb[40].mxu1 %vm533_vm1, %v605_v42 }
 0x396   :  { %1191 = vmatpush3.bf16.msra.mxu0 %v1272_v41 }
 0x397   :  { %1192 = vmatprep.subr.bf16.mxu0 %v1452_v26 }
 0x39a   :  { %1193 = vmatpush3.bf16.msra.mxu0 %v1273_v43 }
 0x39b   :  { %1194 = vmatprep.subr.bf16.mxu0 %v1452_v26 }
 0x39e   :  { %1195 = vmatpush3.bf16.msra.mxu0 %v1274_v44 }
 0x39f   :  { %1196 = vmatprep.subr.bf16.mxu0 %v1452_v26 }
 0x3a2   :  { %1197 = vmatpush3.bf16.msra.mxu0 %v1275_v45 }
 0x3a3   :  { %1198 = vmatprep.subr.bf16.mxu0 %v1452_v26 }
 0x3a6   :  { %1199 = vmatpush3.bf16.msra.mxu0 %v1276_v46 }
 0x3a7   :  { %1200 = vmatprep.subr.bf16.mxu0 %v1452_v26 }
 0x3aa   :  { %1201 = vmatpush3.bf16.msra.mxu0 %v1277_v47 }
 0x440   :  { %v647_v48 = vpop.f32.mrb[4].mxu0 }
 0x441   :  { %v1154_v49 = vpop.f32.mrb[5].mxu0 }
 0x442   :  { %v650_v50 = vpop.f32.mrb[6].mxu0 }
 0x443   :  { %v1155_v51 = vpop.f32.mrb[7].mxu0 }
 0x448   :  { %v693_v52 = vpop.f32.mrb[32].mxu1 }
 0x449   :  { %v883_v53 = vpack.c.bf16 %v693_v52, %v647_v48  ;;  %v1160_v54 = vpop.f32.mrb[33].mxu1 }
 0x44a   :  { %v696_v55 = vpop.f32.mrb[34].mxu1 }
 0x44b   :  { %v1161_v56 = vpop.f32.mrb[35].mxu1  ;;  %1203 = vmatmul.mubr.bf16.vlgmr.msra.gmra.mrb[16].mxu0 %v883_v53 }
 0x44c   :  { %1206 = vmatprep.mubr.msk.bf16.mxu0 %vm1453_vm0, %v1452_v26 }
 0x450   :  { %v739_v57 = vpop.f32.mrb[8].mxu0 }
 0x451   :  { %v1166_v58 = vpop.f32.mrb[9].mxu0 }
 0x452   :  { %v742_v59 = vpop.f32.mrb[10].mxu0 }
 0x453   :  { %v1167_v60 = vpop.f32.mrb[11].mxu0 }
 0x458   :  { %v785_v61 = vpop.f32.mrb[36].mxu1 }
 0x459   :  { %v884_v62 = vpack.c.bf16 %v785_v61, %v739_v57  ;;  %v1172_v63 = vpop.f32.mrb[37].mxu1 }
 0x45a   :  { %v788_v0 = vpop.f32.mrb[38].mxu1 }
 0x45b   :  { %v1173_v1 = vpop.f32.mrb[39].mxu1  ;;  %1207 = vmatmul.mubr.bf16.gmra.mrb[20].mxu0 %v884_v62 }
 0x45c   :  { %1210 = vmatprep.mubr.msk.bf16.mxu0 %vm1453_vm0, %v1452_v26 }
 0x460   :  { %v831_v2 = vpop.f32.mrb[12].mxu0 }
 0x461   :  { %v1178_v3 = vpop.f32.mrb[13].mxu0 }
 0x462   :  { %v834_v4 = vpop.f32.mrb[14].mxu0 }
 0x463   :  { %v1179_v5 = vpop.f32.mrb[15].mxu0 }
 0x468   :  { %v877_v6 = vpop.f32.mrb[40].mxu1 }
 0x469   :  { %v885_v7 = vpack.c.bf16 %v877_v6, %v831_v2  ;;  %v1184_v8 = vpop.f32.mrb[41].mxu1 }
 0x46a   :  { %v880_v9 = vpop.f32.mrb[42].mxu1 }
 0x46b   :  { %v1185_v10 = vpop.f32.mrb[43].mxu1  ;;  %1211 = vmatmul.mubr.bf16.gmra.mrb[24].mxu0 %v885_v7 }
 0x51e   :  { %v991_v11 = vpop.f32.mrb[16].mxu0 }
 0x51f   :  { %v992_v12 = vadd.f32 %v1070_v17, %v991_v11  ;;  %v1204_v13 = vpop.f32.mrb[17].mxu0 }
 0x520   :  { %v994_v14 = vpop.f32.mrb[18].mxu0 }
 0x521   :  { %v1014_v15 = vmax.f32 %v992_v12, 0.0  ;;  %v995_v18 = vadd.f32 %v1070_v17, %v994_v14  ;;  %v1205_v16 = vpop.f32.mrb[19].mxu0 }
 0x523   :  { %1020 = vst [vmem:[#allocation11] sm:$0xff] %v1014_v15  ;;  %v1015_v26 = vmax.f32 %v995_v18, 0.0 }
 0x525   :  { %1021 = vst [vmem:[#allocation11 + $0x8] sm:$0xff] %v1015_v26 }
 0x52e   :  { %v999_v21 = vpop.f32.mrb[20].mxu0 }
 0x52f   :  { %v1000_v22 = vadd.f32 %v1070_v17, %v999_v21  ;;  %v1208_v25 = vpop.f32.mrb[21].mxu0 }
 0x530   :  { %v1002_v27 = vpop.f32.mrb[22].mxu0 }
 0x531   :  { %v1016_v19 = vmax.f32 %v1000_v22, 0.0  ;;  %v1003_v28 = vadd.f32 %v1070_v17, %v1002_v27  ;;  %v1209_v29 = vpop.f32.mrb[23].mxu0 }
 0x533   :  { %1022 = vst [vmem:[#allocation11 + $0x10] sm:$0xff] %v1016_v19  ;;  %v1017_v30 = vmax.f32 %v1003_v28, 0.0 }
 0x535   :  { %1023 = vst [vmem:[#allocation11 + $0x18] sm:$0xff] %v1017_v30 }
 0x53e   :  { %v1007_v31 = vpop.f32.mrb[24].mxu0 }
 0x53f   :  { %v1008_v20 = vadd.f32 %v1070_v17, %v1007_v31  ;;  %v1212_v32 = vpop.f32.mrb[25].mxu0 }
 0x540   :  { %v1010_v33 = vpop.f32.mrb[26].mxu0 }
 0x541   :  { %v1018_v34 = vmax.f32 %v1008_v20, 0.0  ;;  %v1011_v35 = vadd.f32 %v1070_v17, %v1010_v33  ;;  %v1213_v23 = vpop.f32.mrb[27].mxu0 }
 0x543   :  { %1024 = vst [vmem:[#allocation11 + $0x20] sm:$0xff] %v1018_v34  ;;  %v1019_v36 = vmax.f32 %v1011_v35, 0.0 }
 0x545   :  { %1025 = vst [vmem:[#allocation11 + $0x28] sm:$0xff] %v1019_v36 }
 0x546   :  { %1423 = shalt.err (!%p1420_p2)
}
 0x547   :  { %s1424_s11 = scalar_lea.hbm %s1666_s5, 768 }
 0x548   :  { %p1425_p3 = scmp.ne.s32.totalorder %s1666_s5, %s1424_s11  ;;  %p1428_p4 = scmp.lt.u32.totalorder %s1424_s11, %s1666_s5 }
 0x54a   :  { %p1430_p5 = pnand %p1428_p4, %p1425_p3 }
 0x54c   :  { %1433 = shalt.err (!%p1430_p5)
}
 0x54d   :  { %1037 = dma.vmem_to_hbm [thread:$0]  %s1032_s3, 768, %s1666_s5, [#allocation4], %s1443_s28, %s1443_s28, %s1444_s29  }
 0x54e   :  { %1440 = dma.done.wait [#allocation4], 768  }
 0x54f   :  { %1441 = vsyncadd [#allocation4], 4294966528 }
 0x550   :  { %1041 = vsyncpa [#allocation3], 1 }
 0x551   :  { %1042 = vsyncpa [#allocation6], 1 }
 0x552   :  { %1043 = vsyncpa [#allocation9], 1 }
 0x553   :  { %1044 = vsyncpa [#allocation4], 1 }

// kernel: tpu_custom_call.1
= control target key start
LH: loop header
LB: loop body
LE: loop exit
PB: predicated region body
PF: predicated region fallthrough
CT: control target
= control target key end

     0   :  { %10 = vsyncpa [#allocation3], 0  ;;  %s1661_s0 = inlined_call_operand.hbm [shape: bf16[6,8,128], index: 0, kind: input, shape index: {}]   ;;  %s1662_s1 = inlined_call_operand.hbm [shape: bf16[128,256], index: 1, kind: input, shape index: {}]   ;;  %s1663_s2 = inlined_call_operand.hbm [shape: f32[1,256], index: 2, kind: input, shape index: {}]   ;;  %s1664_s3 = inlined_call_operand.hbm [shape: bf16[128,128], index: 3, kind: input, shape index: {}]   ;;  %s1665_s4 = inlined_call_operand.hbm [shape: f32[1,128], index: 4, kind: input, shape index: {}]   ;;  %s1666_s5 = inlined_call_operand.hbm [shape: f32[6,8,128], index: 5, kind: output, shape index: {}]  }
   0x1   :  { %11 = vsyncpa [#allocation6], 0 }
   0x2   :  { %12 = vsyncpa [#allocation9], 0 }
   0x3   :  { %13 = vsyncpa [#allocation4], 0  ;;  %s1442_s18 = smov [#allocation5]   ;;  %s1302_s22 = scalar_lea.hbm %s1662_s1, 2048 }
   0x4   :  { %s31_s19 = sshll.u32 %s1442_s18, 4  ;;  %p1303_p0 = scmp.ne.s32.totalorder %s1662_s1, %s1302_s22  ;;  %s32_s19 = int_to_ptr.vmem [resolvable:$true] %s31_s19 }
   0x5   :  { %p1306_p1 = scmp.lt.u32.totalorder %s1302_s22, %s1662_s1 }
   0x7   :  { %p1308_p2 = pnand %p1306_p1, %p1303_p0 }
   0x9   :  { %1311 = shalt.err (!%p1308_p2)
}
   0xa   :  { %s1312_s27 = scalar_lea.vmem %s32_s19, 2048  ;;  %p1317_p4 = scmp.lt.s32.totalorder %s32_s19, %s32_s19 }
   0xb   :  { %p1313_p3 = scmp.ne.s32.totalorder %s32_s19, %s1312_s27  ;;  %p1318_p5 = scmp.lt.s32.totalorder %s1312_s27, %s1312_s27 }
   0xd   :  { %p1319_p6 = por %p1318_p5, %p1317_p4 }
   0xf   :  { %p1320_p7 = pnand %p1319_p6, %p1313_p3 }
  0x11   :  { %1323 = shalt.err (!%p1320_p7)
}
  0x12   :  { %s1443_s28 = smov 128   ;;  %s1444_s29 = smov 8  }
  0x13   :  { %37 = dma.hbm_to_vmem [thread:$0]  %s1662_s1, 2048, %s32_s19, [#allocation6], %s1443_s28, %s1443_s28, %s1444_s29  }
  0x14   :  { %s1445_s7 = smov [#allocation8]   ;;  %s1446_s9 = smov [#allocation2]  }
  0x15   :  { %s53_s8 = sshll.u32 %s1445_s7, 4  ;;  %s19_s10 = sshll.u32 %s1446_s9, 4  ;;  %s54_s8 = int_to_ptr.vmem [resolvable:$true] %s53_s8  ;;  %s20_s10 = int_to_ptr.vmem [resolvable:$true] %s19_s10 }
  0x16   :  { %s1324_s13 = scalar_lea.hbm %s1664_s3, 1024 }
  0x17   :  { %p1325_p8 = scmp.ne.s32.totalorder %s1664_s3, %s1324_s13  ;;  %p1328_p9 = scmp.lt.u32.totalorder %s1324_s13, %s1664_s3 }
  0x19   :  { %p1330_p10 = pnand %p1328_p9, %p1325_p8 }
  0x1b   :  { %1333 = shalt.err (!%p1330_p10)
}
  0x1c   :  { %s1334_s1 = scalar_lea.vmem %s54_s8, 1024  ;;  %p1339_p12 = scmp.lt.s32.totalorder %s54_s8, %s54_s8 }
  0x1d   :  { %p1335_p11 = scmp.ne.s32.totalorder %s54_s8, %s1334_s1  ;;  %p1340_p13 = scmp.lt.s32.totalorder %s1334_s1, %s1334_s1 }
  0x1f   :  { %p1341_p0 = por %p1340_p13, %p1339_p12 }
  0x21   :  { %p1342_p1 = pnand %p1341_p0, %p1335_p11 }
  0x23   :  { %1345 = shalt.err (!%p1342_p1)
}
  0x24   :  { %s1447_s18 = smov 64   ;;  %s1448_s19 = smov 4  }
  0x25   :  { %59 = dma.hbm_to_vmem [thread:$0]  %s1664_s3, 1024, %s54_s8, [#allocation9], %s1447_s18, %s1447_s18, %s1448_s19  }
  0x26   :  { %s1346_s24 = scalar_lea.hbm %s1661_s0, 384 }
  0x27   :  { %p1347_p2 = scmp.ne.s32.totalorder %s1661_s0, %s1346_s24  ;;  %p1350_p3 = scmp.lt.u32.totalorder %s1346_s24, %s1661_s0 }
  0x29   :  { %p1352_p4 = pnand %p1350_p3, %p1347_p2 }
  0x2b   :  { %1355 = shalt.err (!%p1352_p4)
}
  0x2c   :  { %s1356_s6 = scalar_lea.vmem %s20_s10, 384  ;;  %p1361_p6 = scmp.lt.s32.totalorder %s20_s10, %s20_s10 }
  0x2d   :  { %p1357_p5 = scmp.ne.s32.totalorder %s20_s10, %s1356_s6  ;;  %p1362_p7 = scmp.lt.s32.totalorder %s1356_s6, %s1356_s6 }
  0x2f   :  { %p1363_p8 = por %p1362_p7, %p1361_p6 }
  0x31   :  { %p1364_p9 = pnand %p1363_p8, %p1357_p5 }
  0x33   :  { %1367 = shalt.err (!%p1364_p9)
}
  0x34   :  { %25 = dma.hbm_to_vmem [thread:$0]  %s1661_s0, 384, %s20_s10, [#allocation3], %s1447_s18, %s1447_s18, %s1448_s19  }
  0x35   :  { %s1449_s8 = smov [#allocation7]   ;;  %s1450_s11 = smov [#allocation10]  }
  0x36   :  { %s44_s9 = sshll.u32 %s1449_s8, 4  ;;  %s66_s12 = sshll.u32 %s1450_s11, 4  ;;  %s45_s9 = int_to_ptr.vmem [resolvable:$true] %s44_s9  ;;  %s67_s12 = int_to_ptr.vmem [resolvable:$true] %s66_s12 }
  0x37   :  { %s1368_s15 = scalar_lea.hbm %s1663_s2, 32 }
  0x38   :  { %p1369_p10 = scmp.ne.s32.totalorder %s1663_s2, %s1368_s15  ;;  %p1372_p11 = scmp.lt.u32.totalorder %s1368_s15, %s1663_s2 }
  0x3a   :  { %p1374_p12 = pnand %p1372_p11, %p1369_p10 }
  0x3c   :  { %1377 = shalt.err (!%p1374_p12)
}
  0x3d   :  { %s1378_s0 = scalar_lea.vmem %s45_s9, 32  ;;  %p1383_p0 = scmp.lt.s32.totalorder %s45_s9, %s45_s9 }
  0x3e   :  { %p1379_p13 = scmp.ne.s32.totalorder %s45_s9, %s1378_s0  ;;  %p1384_p1 = scmp.lt.s32.totalorder %s1378_s0, %s1378_s0 }
  0x40   :  { %p1385_p2 = por %p1384_p1, %p1383_p0 }
  0x42   :  { %p1386_p3 = pnand %p1385_p2, %p1379_p13 }
  0x44   :  { %1389 = shalt.err (!%p1386_p3)
}
  0x45   :  { %47 = dma.hbm_to_vmem [thread:$0]  %s1663_s2, 32, %s45_s9, [#allocation6]  }
  0x46   :  { %s1390_s22 = scalar_lea.hbm %s1665_s4, 16 }
  0x47   :  { %p1391_p4 = scmp.ne.s32.totalorder %s1665_s4, %s1390_s22  ;;  %p1394_p5 = scmp.lt.u32.totalorder %s1390_s22, %s1665_s4 }
  0x49   :  { %p1396_p6 = pnand %p1394_p5, %p1391_p4 }
  0x4b   :  { %1399 = shalt.err (!%p1396_p6)
}
  0x4c   :  { %s1400_s27 = scalar_lea.vmem %s67_s12, 16  ;;  %s1404_s30 = scalar_lea.vmem %s67_s12, 32 }
  0x4d   :  { %p1401_p7 = scmp.ne.s32.totalorder %s67_s12, %s1400_s27  ;;  %p1405_p8 = scmp.lt.s32.totalorder %s67_s12, %s67_s12 }
  0x4e   :  { %p1406_p9 = scmp.lt.s32.totalorder %s1404_s30, %s1400_s27 }
  0x50   :  { %p1407_p10 = por %p1406_p9, %p1405_p8 }
  0x52   :  { %p1408_p11 = pnand %p1407_p10, %p1401_p7 }
  0x54   :  { %1411 = shalt.err (!%p1408_p11)
}
  0x55   :  { %69 = dma.hbm_to_vmem [thread:$0]  %s1665_s4, 16, %s67_s12, [#allocation9]  }
  0x56   :  { %1434 = dma.done.wait [#allocation3], 384  }
  0x57   :  { %1435 = vsyncadd [#allocation3], 4294966912 }
  0x58   :  { %1436 = dma.done.wait [#allocation6], 2080  }
  0x59   :  { %1437 = vsyncadd [#allocation6], 4294965216 }
  0x5a   :  { %1438 = dma.done.wait [#allocation9], 1040  }
  0x5b   :  { %1439 = vsyncadd [#allocation9], 4294966256  ;;  %v1451_v0 = vmov 0   ;;  %v1243_v1 = vld [vmem:[#allocation5 + $0x4] ss:$8 sps:$4 sm:$0xff]   ;;  %v1452_v26 = vmov 0.0   ;;  %v110_v27 = vlaneseq }
  0x5c   :  { %250 = vmatprep.mubr.bf16.mxu0 %v1451_v0  ;;  %260 = vmatprep.mubr.bf16.mxu1 %v1451_v0  ;;  %v1245_v2 = vld [vmem:[#allocation5] ss:$8 sps:$4 sm:$0xff]   ;;  %v1246_v3 = vld [vmem:[#allocation5 + $0x14] ss:$8 sps:$4 sm:$0xff]   ;;  %v1248_v4 = vld [vmem:[#allocation5 + $0x10] ss:$8 sps:$4 sm:$0xff]  }
  0x5d   :  { %218 = vmatprep.subr.bf16.mxu0 %v1243_v1  ;;  %1214 = vmatprep.subr.bf16.mxu1 %v1243_v1  ;;  %v1249_v5 = vld [vmem:[#allocation5 + $0x24] ss:$8 sps:$4 sm:$0xff]   ;;  %v1251_v6 = vld [vmem:[#allocation5 + $0x20] ss:$8 sps:$4 sm:$0xff]   ;;  %v1252_v7 = vld [vmem:[#allocation5 + $0x34] ss:$8 sps:$4 sm:$0xff]  }
  0x5e   :  { %219 = vmatpush1.bf16.msra.mxu0 %v1245_v2  ;;  %1222 = vmatpush1.bf16.msra.mxu1 %v1245_v2  ;;  %v1254_v8 = vld [vmem:[#allocation5 + $0x30] ss:$8 sps:$4 sm:$0xff]   ;;  %v1255_v9 = vld [vmem:[#allocation5 + $0x44] ss:$8 sps:$4 sm:$0xff]   ;;  %v1257_v10 = vld [vmem:[#allocation5 + $0x40] ss:$8 sps:$4 sm:$0xff]  }
  0x5f   :  { %220 = vmatprep.subr.bf16.mxu0 %v1246_v3  ;;  %1215 = vmatprep.subr.bf16.mxu1 %v1246_v3  ;;  %v1258_v11 = vld [vmem:[#allocation5 + $0x54] ss:$8 sps:$4 sm:$0xff]   ;;  %v1260_v12 = vld [vmem:[#allocation5 + $0x50] ss:$8 sps:$4 sm:$0xff]   ;;  %v1261_v13 = vld [vmem:[#allocation5 + $0x64] ss:$8 sps:$4 sm:$0xff]  }
  0x60   :  { %v1263_v14 = vld [vmem:[#allocation5 + $0x60] ss:$8 sps:$4 sm:$0xff]   ;;  %v1264_v15 = vld [vmem:[#allocation5 + $0x74] ss:$8 sps:$4 sm:$0xff]   ;;  %v1266_v16 = vld [vmem:[#allocation5 + $0x70] ss:$8 sps:$4 sm:$0xff]  }
  0x61   :  { %v1548_v17 = vld [vmem:[#allocation2] sm:$0xf]  ;;  %v1550_v18 = vld [vmem:[#allocation2 + $0x4] sm:$0xf]  ;;  %v1552_v19 = vld [vmem:[#allocation2 + $0x8] sm:$0xf] }
  0x62   :  { %221 = vmatpush1.bf16.msra.mxu0 %v1248_v4  ;;  %1223 = vmatpush1.bf16.msra.mxu1 %v1248_v4  ;;  %v1554_v20 = vld [vmem:[#allocation2 + $0xc] sm:$0xf]  ;;  %v1045_v21 = vcombine.low %v1548_v17, %v1550_v18  ;;  %v1560_v23 = vld [vmem:[#allocation2 + $0x10] sm:$0xf]  ;;  %v1562_v24 = vld [vmem:[#allocation2 + $0x14] sm:$0xf] }
  0x63   :  { %222 = vmatprep.subr.bf16.mxu0 %v1249_v5  ;;  %1216 = vmatprep.subr.bf16.mxu1 %v1249_v5  ;;  %v1046_v22 = vcombine.low %v1552_v19, %v1554_v20  ;;  %v1047_v25 = vcombine.low %v1560_v23, %v1562_v24  ;;  %vm1453_vm0 = vmmov 0   ;;  %v111_v28 = vshrl.u32 %v110_v27, 7  ;;  %v108_v30 = vld [vmem:[#allocation7] sm:$0x3]  ;;  %s1454_s4 = smov [#allocation11]  }
  0x64   :  { %vm533_vm1 = vcmask 64512   ;;  %vm609_vm2 = vcmask 1043456   ;;  %s1031_s3 = sshll.u32 %s1454_s4, 4  ;;  %s1032_s3 = int_to_ptr.vmem [resolvable:$true] %s1031_s3 }
  0x65   :  { %v116_v29 = vsub.s32 1, %v111_v28  ;;  %v112_v32 = vsub.s32 0, %v111_v28  ;;  %s1412_s7 = scalar_lea.vmem %s1032_s3, 768  ;;  %p1417_p13 = scmp.lt.s32.totalorder %s1032_s3, %s1032_s3 }
  0x66   :  { %223 = vmatpush1.bf16.msra.mxu0 %v1251_v6  ;;  %1224 = vmatpush1.bf16.msra.mxu1 %v1251_v6  ;;  %p1413_p12 = scmp.ne.s32.totalorder %s1032_s3, %s1412_s7  ;;  %p1418_p0 = scmp.lt.s32.totalorder %s1412_s7, %s1412_s7 }
  0x67   :  { %224 = vmatprep.subr.bf16.mxu0 %v1252_v7  ;;  %1217 = vmatprep.subr.bf16.mxu1 %v1252_v7  ;;  %v117_v31 = vrot.slane %v108_v30, %v116_v29  ;;  %v113_v40 = vrot.slane %v108_v30, %v112_v32 }
  0x68   :  { %p1419_p1 = por %p1418_p0, %p1417_p13 }
  0x6a   :  { %225 = vmatpush1.bf16.msra.mxu0 %v1254_v8  ;;  %1225 = vmatpush1.bf16.msra.mxu1 %v1254_v8  ;;  %p1420_p2 = pnand %p1419_p1, %p1413_p12 }
  0x6b   :  { %226 = vmatprep.subr.bf16.mxu0 %v1255_v9  ;;  %1218 = vmatprep.subr.bf16.mxu1 %v1255_v9 }
  0x6e   :  { %227 = vmatpush1.bf16.msra.mxu0 %v1257_v10  ;;  %1226 = vmatpush1.bf16.msra.mxu1 %v1257_v10 }
  0x6f   :  { %228 = vmatprep.subr.bf16.mxu0 %v1258_v11  ;;  %1219 = vmatprep.subr.bf16.mxu1 %v1258_v11 }
  0x72   :  { %229 = vmatpush1.bf16.msra.mxu0 %v1260_v12  ;;  %1227 = vmatpush1.bf16.msra.mxu1 %v1260_v12 }
  0x73   :  { %230 = vmatprep.subr.bf16.mxu0 %v1261_v13  ;;  %1220 = vmatprep.subr.bf16.mxu1 %v1261_v13 }
  0x76   :  { %231 = vmatpush1.bf16.msra.mxu0 %v1263_v14  ;;  %1228 = vmatpush1.bf16.msra.mxu1 %v1263_v14 }
  0x77   :  { %232 = vmatprep.subr.bf16.mxu0 %v1264_v15  ;;  %1221 = vmatprep.subr.bf16.mxu1 %v1264_v15 }
  0x7a   :  { %233 = vmatpush1.bf16.msra.mxu0 %v1266_v16  ;;  %1229 = vmatpush1.bf16.msra.mxu1 %v1266_v16 }
  0x7b   :  { %1114 = vmatprep.subr.bf16.mxu1 %v1452_v26  ;;  %1150 = vmatprep.subr.bf16.mxu0 %v1452_v26 }
  0x7d   :  { %251 = vmatmul.mubr.bf16.vlgmr.msra.gmra.mrb[0].mxu0 %v1045_v21  ;;  %261 = vmatmul.mubr.bf16.vlgmr.msra.gmra.mrb[0].mxu1 %v1046_v22 }
  0x7e   :  { %270 = vmatprep.mubr.bf16.mxu1 %v1451_v0  ;;  %1152 = vmatprep.mubr.msk.bf16.mxu0 %vm1453_vm0, %v1452_v26 }
  0x85   :  { %271 = vmatmul.mubr.bf16.gmra.mrb[4].mxu1 %v1047_v25 }
  0x86   :  { %1116 = vmatprep.mubr.msk.bf16.mxu1 %vm1453_vm0, %v1452_v26 }
 0x150   :  { %v252_v33 = vpop.f32.mrb[0].mxu0  ;;  %v262_v34 = vpop.f32.mrb[0].mxu1 }
 0x151   :  { %v254_v35 = vpop.f32.mrb[1].mxu0  ;;  %v264_v36 = vpop.f32.mrb[1].mxu1  ;;  %v253_v44 = vadd.f32 %v252_v33, %v113_v40  ;;  %v263_v56 = vadd.f32 %v262_v34, %v113_v40 }
 0x152   :  { %v255_v37 = vadd.f32 %v254_v35, %v117_v31  ;;  %v256_v38 = vpop.f32.mrb[2].mxu0  ;;  %v266_v39 = vpop.f32.mrb[2].mxu1  ;;  %v265_v52 = vadd.f32 %v264_v36, %v117_v31 }
 0x153   :  { %v258_v41 = vpop.f32.mrb[3].mxu0  ;;  %v268_v42 = vpop.f32.mrb[3].mxu1  ;;  %v281_v49 = vpack.c.bf16 %v253_v44, %v253_v44  ;;  %v257_v53 = vadd.f32 %v256_v38, %v113_v40  ;;  %v283_v58 = vpack.c.bf16 %v263_v56, %v263_v56  ;;  %v267_v61 = vadd.f32 %v266_v39, %v113_v40 }
 0x154   :  { %v287_v43 = vpack.c.bf16 %v255_v37, %v255_v37  ;;  %v259_v45 = vadd.f32 %v258_v41, %v117_v31  ;;  %v289_v54 = vpack.c.bf16 %v265_v52, %v265_v52  ;;  %v269_v57 = vadd.f32 %v268_v42, %v117_v31 }
 0x155   :  { %v282_v55 = vpack.c.bf16 %v257_v53, %v257_v53  ;;  %v284_v63 = vpack.c.bf16 %v267_v61, %v267_v61 }
 0x156   :  { %1115 = vmatpush3.bf16.xpose.msra.mxu1 %v287_v43  ;;  %v288_v51 = vpack.c.bf16 %v259_v45, %v259_v45  ;;  %v290_v59 = vpack.c.bf16 %v269_v57, %v269_v57 }
 0x157   :  { %1120 = vmatprep.subr.bf16.mxu1 %v1452_v26 }
 0x158   :  { %v272_v46 = vpop.f32.mrb[4].mxu1 }
 0x159   :  { %v274_v47 = vpop.f32.mrb[5].mxu1  ;;  %v273_v0 = vadd.f32 %v272_v46, %v113_v40 }
 0x15a   :  { %v276_v48 = vpop.f32.mrb[6].mxu1  ;;  %v275_v60 = vadd.f32 %v274_v47, %v117_v31 }
 0x15b   :  { %v278_v50 = vpop.f32.mrb[7].mxu1  ;;  %v285_v2 = vpack.c.bf16 %v273_v0, %v273_v0  ;;  %v277_v4 = vadd.f32 %v276_v48, %v113_v40 }
 0x15c   :  { %v291_v62 = vpack.c.bf16 %v275_v60, %v275_v60  ;;  %v279_v1 = vadd.f32 %v278_v50, %v117_v31 }
 0x15d   :  { %1117 = vmatmul.mubr.bf16.vlgmr.msra.gmra.mrb[8].mxu1 %v281_v49  ;;  %v286_v5 = vpack.c.bf16 %v277_v4, %v277_v4  ;;  %v611_v4 = vsel %vm609_vm2, %v1548_v17, 0 }
 0x15e   :  { %1121 = vmatpush3.bf16.xpose.msra.mxu1 %v288_v51  ;;  %1122 = vmatprep.mubr.msk.bf16.mxu1 %vm1453_vm0, %v1452_v26  ;;  %v292_v3 = vpack.c.bf16 %v279_v1, %v279_v1 }
 0x15f   :  { %1126 = vmatprep.subr.bf16.mxu1 %v1452_v26  ;;  %1151 = vmatpush3.bf16.msra.mxu0 %v611_v4 }
 0x160   :  { %1162 = vmatprep.subr.bf16.mxu0 %v1452_v26 }
 0x165   :  { %1123 = vmatmul.mubr.bf16.vlgmr.msra.gmra.mrb[12].mxu1 %v282_v55 }
 0x166   :  { %1127 = vmatpush3.bf16.xpose.msra.mxu1 %v289_v54  ;;  %1128 = vmatprep.mubr.msk.bf16.mxu1 %vm1453_vm0, %v1452_v26 }
 0x167   :  { %1132 = vmatprep.subr.bf16.mxu1 %v1452_v26 }
 0x16d   :  { %1129 = vmatmul.mubr.bf16.vlgmr.msra.gmra.mrb[16].mxu1 %v283_v58 }
 0x16e   :  { %1133 = vmatpush3.bf16.xpose.msra.mxu1 %v290_v59  ;;  %1134 = vmatprep.mubr.msk.bf16.mxu1 %vm1453_vm0, %v1452_v26 }
 0x16f   :  { %1138 = vmatprep.subr.bf16.mxu1 %v1452_v26 }
 0x175   :  { %1135 = vmatmul.mubr.bf16.vlgmr.msra.gmra.mrb[20].mxu1 %v284_v63 }
 0x176   :  { %1139 = vmatpush3.bf16.xpose.msra.mxu1 %v291_v62  ;;  %1140 = vmatprep.mubr.msk.bf16.mxu1 %vm1453_vm0, %v1452_v26 }
 0x177   :  { %1144 = vmatprep.subr.bf16.mxu1 %v1452_v26 }
 0x17d   :  { %1141 = vmatmul.mubr.bf16.vlgmr.msra.gmra.mrb[24].mxu1 %v285_v2 }
 0x17e   :  { %1145 = vmatpush3.bf16.xpose.msra.mxu1 %v292_v3  ;;  %1146 = vmatprep.mubr.msk.bf16.mxu1 %vm1453_vm0, %v1452_v26 }
 0x17f   :  { %1156 = vmatprep.subr.bf16.mxu1 %v1452_v26 }
 0x185   :  { %1147 = vmatmul.mubr.bf16.vlgmr.msra.gmra.mrb[28].mxu1 %v286_v5 }
 0x186   :  { %1158 = vmatprep.mubr.msk.bf16.mxu1 %vm1453_vm0, %v1452_v26 }
 0x230   :  { %v327_v6 = vpop.f32.mrb[8].mxu1 }
 0x231   :  { %v1118_v7 = vpop.f32.mrb[9].mxu1  ;;  %v534_v8 = vsel %vm533_vm1, %v327_v6, -inf }
 0x232   :  { %535 = vmax.xlane.f32.xlu0 %v534_v8  ;;  %v330_v9 = vpop.f32.mrb[10].mxu1  ;;  %v657_v8 = vsel %vm609_vm2, %v1550_v18, 0 }
 0x233   :  { %v1119_v10 = vpop.f32.mrb[11].mxu1  ;;  %1157 = vmatpush3.bf16.msra.mxu1 %v657_v8 }
 0x234   :  { %1168 = vmatprep.subr.bf16.mxu1 %v1452_v26 }
 0x238   :  { %v367_v11 = vpop.f32.mrb[12].mxu1 }
 0x239   :  { %v1124_v12 = vpop.f32.mrb[13].mxu1  ;;  %v537_v13 = vsel %vm533_vm1, %v367_v11, -inf }
 0x23a   :  { %538 = vmax.xlane.f32.xlu0 %v537_v13  ;;  %v370_v14 = vpop.f32.mrb[14].mxu1 }
 0x23b   :  { %v1125_v15 = vpop.f32.mrb[15].mxu1 }
 0x23c   :  { %v703_v15 = vsel %vm609_vm2, %v1552_v19, 0 }
 0x240   :  { %v407_v16 = vpop.f32.mrb[16].mxu1 }
 0x241   :  { %v1130_v21 = vpop.f32.mrb[17].mxu1  ;;  %v540_v22 = vsel %vm533_vm1, %v407_v16, -inf }
 0x242   :  { %541 = vmax.xlane.f32.xlu1 %v540_v22  ;;  %v410_v25 = vpop.f32.mrb[18].mxu1 }
 0x243   :  { %v1131_v27 = vpop.f32.mrb[19].mxu1  ;;  %v749_v25 = vsel %vm609_vm2, %v1554_v20, 0 }
 0x248   :  { %v447_v28 = vpop.f32.mrb[20].mxu1 }
 0x249   :  { %v1136_v29 = vpop.f32.mrb[21].mxu1  ;;  %v543_v30 = vsel %vm533_vm1, %v447_v28, -inf }
 0x24a   :  { %544 = vmax.xlane.f32.xlu1 %v543_v30  ;;  %v450_v31 = vpop.f32.mrb[22].mxu1  ;;  %v795_v30 = vsel %vm609_vm2, %v1560_v23, 0 }
 0x24b   :  { %v1137_v32 = vpop.f32.mrb[23].mxu1 }
 0x250   :  { %v487_v33 = vpop.f32.mrb[24].mxu1 }
 0x251   :  { %v1142_v34 = vpop.f32.mrb[25].mxu1  ;;  %v546_v35 = vsel %vm533_vm1, %v487_v33, -inf }
 0x252   :  { %547 = vmax.xlane.f32.xlu0 %v546_v35  ;;  %v490_v36 = vpop.f32.mrb[26].mxu1  ;;  %v841_v34 = vsel %vm609_vm2, %v1562_v24, 0 }
 0x253   :  { %v1143_v37 = vpop.f32.mrb[27].mxu1 }
 0x254   :  { %v1270_v37 = vld [vmem:[#allocation8] sm:$0xff]  }
 0x258   :  { %v527_v38 = vpop.f32.mrb[28].mxu1 }
 0x259   :  { %v1148_v39 = vpop.f32.mrb[29].mxu1  ;;  %v549_v40 = vsel %vm533_vm1, %v527_v38, -inf }
 0x25a   :  { %550 = vmax.xlane.f32.xlu1 %v549_v40  ;;  %v530_v41 = vpop.f32.mrb[30].mxu1  ;;  %v1271_v39 = vld [vmem:[#allocation8 + $0x8] sm:$0xff]  }
 0x25b   :  { %v1149_v42 = vpop.f32.mrb[31].mxu1  ;;  %v1272_v41 = vld [vmem:[#allocation8 + $0x10] sm:$0xff]  }
 0x2bf   :  { %v536_v43 = vpop.xlane.xlu0 %535 }
 0x2c0   :  { %v552_v44 = vsub.f32 %v327_v6, %v536_v43  ;;  %v1273_v43 = vld [vmem:[#allocation8 + $0x18] sm:$0xff]  }
 0x2c2   :  { %v558_v45 = vmul.f32 1.442695, %v552_v44  ;;  %v1274_v44 = vld [vmem:[#allocation8 + $0x20] sm:$0xff]  }
 0x2c4   :  { %1278 = vpow2.f32 %v558_v45  ;;  %v1275_v45 = vld [vmem:[#allocation8 + $0x28] sm:$0xff]  }
 0x2c7   :  { %v539_v46 = vpop.xlane.xlu0 %538 }
 0x2c8   :  { %v553_v47 = vsub.f32 %v367_v11, %v539_v46  ;;  %v1276_v46 = vld [vmem:[#allocation8 + $0x30] sm:$0xff]  }
 0x2ca   :  { %v560_v48 = vmul.f32 1.442695, %v553_v47  ;;  %v1277_v47 = vld [vmem:[#allocation8 + $0x38] sm:$0xff]  }
 0x2cc   :  { %1280 = vpow2.f32 %v560_v48 }
 0x2ce   :  { %v1279_v49 = vpop.eup %1278 }
 0x2cf   :  { %v542_v50 = vpop.xlane.xlu1 %541  ;;  %v570_v51 = vsel %vm533_vm1, %v1279_v49, 0.0 }
 0x2d0   :  { %v554_v52 = vsub.f32 %v407_v16, %v542_v50  ;;  %571 = vadd.xlane.f32.xlu0 %v570_v51 }
 0x2d2   :  { %v562_v53 = vmul.f32 1.442695, %v554_v52 }
 0x2d4   :  { %1282 = vpow2.f32 %v562_v53 }
 0x2d6   :  { %v1281_v54 = vpop.eup %1280 }
 0x2d7   :  { %v545_v55 = vpop.xlane.xlu1 %544  ;;  %v573_v56 = vsel %vm533_vm1, %v1281_v54, 0.0 }
 0x2d8   :  { %v555_v57 = vsub.f32 %v447_v28, %v545_v55  ;;  %574 = vadd.xlane.f32.xlu1 %v573_v56 }
 0x2da   :  { %v564_v58 = vmul.f32 1.442695, %v555_v57 }
 0x2dc   :  { %1284 = vpow2.f32 %v564_v58 }
 0x2de   :  { %v1283_v59 = vpop.eup %1282 }
 0x2df   :  { %v548_v60 = vpop.xlane.xlu0 %547  ;;  %v576_v61 = vsel %vm533_vm1, %v1283_v59, 0.0 }
 0x2e0   :  { %v556_v62 = vsub.f32 %v487_v33, %v548_v60  ;;  %577 = vadd.xlane.f32.xlu0 %v576_v61 }
 0x2e2   :  { %v566_v63 = vmul.f32 1.442695, %v556_v62 }
 0x2e4   :  { %1286 = vpow2.f32 %v566_v63 }
 0x2e6   :  { %v1285_v0 = vpop.eup %1284 }
 0x2e7   :  { %v551_v1 = vpop.xlane.xlu1 %550  ;;  %v579_v2 = vsel %vm533_vm1, %v1285_v0, 0.0 }
 0x2e8   :  { %v557_v3 = vsub.f32 %v527_v38, %v551_v1  ;;  %580 = vadd.xlane.f32.xlu1 %v579_v2 }
 0x2ea   :  { %v568_v5 = vmul.f32 1.442695, %v557_v3 }
 0x2ec   :  { %1288 = vpow2.f32 %v568_v5 }
 0x2ee   :  { %v1287_v6 = vpop.eup %1286 }
 0x2ef   :  { %v582_v7 = vsel %vm533_vm1, %v1287_v6, 0.0 }
 0x2f0   :  { %583 = vadd.xlane.f32.xlu0 %v582_v7 }
 0x2f6   :  { %v1289_v9 = vpop.eup %1288 }
 0x2f7   :  { %v585_v10 = vsel %vm533_vm1, %v1289_v9, 0.0 }
 0x2f8   :  { %586 = vadd.xlane.f32.xlu1 %v585_v10 }
 0x35d   :  { %v572_v17 = vpop.xlane.xlu0 %571 }
 0x35e   :  { %1290 = vrcp.f32 %v572_v17  ;;  %v1070_v17 = vld [vmem:[#allocation10] ss:$0 sm:$0xff] }
 0x365   :  { %v575_v11 = vpop.xlane.xlu1 %574 }
 0x366   :  { %1292 = vrcp.f32 %v575_v11 }
 0x368   :  { %v1291_v12 = vpop.eup %1290 }
 0x369   :  { %v594_v13 = vmul.f32 %v1291_v12, %v1279_v49 }
 0x36b   :  { %v600_v14 = vpack.c.bf16 %v594_v13, %v594_v13 }
 0x36d   :  { %1153 = vmatmul.mubr.msk.bf16.vlgmr.msra.gmra.mrb[4].mxu0 %vm533_vm1, %v600_v14  ;;  %v578_v18 = vpop.xlane.xlu0 %577 }
 0x36e   :  { %1294 = vrcp.f32 %v578_v18  ;;  %1163 = vmatpush3.bf16.msra.mxu0 %v703_v15  ;;  %1164 = vmatprep.mubr.msk.bf16.mxu0 %vm1453_vm0, %v1452_v26 }
 0x36f   :  { %1174 = vmatprep.subr.bf16.mxu0 %v1452_v26 }
 0x370   :  { %v1293_v16 = vpop.eup %1292 }
 0x371   :  { %v595_v21 = vmul.f32 %v1293_v16, %v1281_v54 }
 0x373   :  { %v601_v22 = vpack.c.bf16 %v595_v21, %v595_v21 }
 0x375   :  { %1159 = vmatmul.mubr.msk.bf16.vlgmr.msra.gmra.mrb[32].mxu1 %vm533_vm1, %v601_v22  ;;  %v581_v27 = vpop.xlane.xlu1 %580 }
 0x376   :  { %1296 = vrcp.f32 %v581_v27  ;;  %1169 = vmatpush3.bf16.msra.mxu1 %v749_v25  ;;  %1170 = vmatprep.mubr.msk.bf16.mxu1 %vm1453_vm0, %v1452_v26 }
 0x377   :  { %1180 = vmatprep.subr.bf16.mxu1 %v1452_v26 }
 0x378   :  { %v1295_v19 = vpop.eup %1294 }
 0x379   :  { %v596_v28 = vmul.f32 %v1295_v19, %v1283_v59 }
 0x37b   :  { %v602_v29 = vpack.c.bf16 %v596_v28, %v596_v28 }
 0x37d   :  { %1165 = vmatmul.mubr.msk.bf16.vlgmr.msra.gmra.mrb[8].mxu0 %vm533_vm1, %v602_v29  ;;  %v584_v31 = vpop.xlane.xlu0 %583 }
 0x37e   :  { %1298 = vrcp.f32 %v584_v31  ;;  %1175 = vmatpush3.bf16.msra.mxu0 %v795_v30  ;;  %1176 = vmatprep.mubr.msk.bf16.mxu0 %vm1453_vm0, %v1452_v26 }
 0x37f   :  { %1186 = vmatprep.subr.bf16.mxu0 %v1452_v26 }
 0x380   :  { %v1297_v20 = vpop.eup %1296 }
 0x381   :  { %v597_v32 = vmul.f32 %v1297_v20, %v1285_v0 }
 0x383   :  { %v603_v33 = vpack.c.bf16 %v597_v32, %v597_v32 }
 0x385   :  { %1171 = vmatmul.mubr.msk.bf16.vlgmr.msra.gmra.mrb[36].mxu1 %vm533_vm1, %v603_v33  ;;  %v587_v35 = vpop.xlane.xlu1 %586 }
 0x386   :  { %1300 = vrcp.f32 %v587_v35  ;;  %1181 = vmatpush3.bf16.msra.mxu1 %v841_v34  ;;  %1182 = vmatprep.mubr.msk.bf16.mxu1 %vm1453_vm0, %v1452_v26 }
 0x388   :  { %v1299_v23 = vpop.eup %1298 }
 0x389   :  { %v598_v36 = vmul.f32 %v1299_v23, %v1287_v6 }
 0x38b   :  { %v604_v38 = vpack.c.bf16 %v598_v36, %v598_v36 }
 0x38d   :  { %1177 = vmatmul.mubr.msk.bf16.vlgmr.msra.gmra.mrb[12].mxu0 %vm533_vm1, %v604_v38 }
 0x38e   :  { %1187 = vmatpush3.bf16.msra.mxu0 %v1270_v37  ;;  %1202 = vmatprep.mubr.msk.bf16.mxu0 %vm1453_vm0, %v1452_v26 }
 0x38f   :  { %1188 = vmatprep.subr.bf16.mxu0 %v1452_v26 }
 0x390   :  { %v1301_v24 = vpop.eup %1300 }
 0x391   :  { %v599_v40 = vmul.f32 %v1301_v24, %v1289_v9 }
 0x392   :  { %1189 = vmatpush3.bf16.msra.mxu0 %v1271_v39 }
 0x393   :  { %v605_v42 = vpack.c.bf16 %v599_v40, %v599_v40  ;;  %1190 = vmatprep.subr.bf16.mxu0 %v1452_v26 }
 0x395   :  { %1183 = vmatmul.mubr.msk.bf16.vlgmr.msra.gmra.mrb[40].mxu1 %vm533_vm1, %v605_v42 }
 0x396   :  { %1191 = vmatpush3.bf16.msra.mxu0 %v1272_v41 }
 0x397   :  { %1192 = vmatprep.subr.bf16.mxu0 %v1452_v26 }
 0x39a   :  { %1193 = vmatpush3.bf16.msra.mxu0 %v1273_v43 }
 0x39b   :  { %1194 = vmatprep.subr.bf16.mxu0 %v1452_v26 }
 0x39e   :  { %1195 = vmatpush3.bf16.msra.mxu0 %v1274_v44 }
 0x39f   :  { %1196 = vmatprep.subr.bf16.mxu0 %v1452_v26 }
 0x3a2   :  { %1197 = vmatpush3.bf16.msra.mxu0 %v1275_v45 }
 0x3a3   :  { %1198 = vmatprep.subr.bf16.mxu0 %v1452_v26 }
 0x3a6   :  { %1199 = vmatpush3.bf16.msra.mxu0 %v1276_v46 }
 0x3a7   :  { %1200 = vmatprep.subr.bf16.mxu0 %v1452_v26 }
 0x3aa   :  { %1201 = vmatpush3.bf16.msra.mxu0 %v1277_v47 }
 0x440   :  { %v647_v48 = vpop.f32.mrb[4].mxu0 }
 0x441   :  { %v1154_v49 = vpop.f32.mrb[5].mxu0 }
 0x442   :  { %v650_v50 = vpop.f32.mrb[6].mxu0 }
 0x443   :  { %v1155_v51 = vpop.f32.mrb[7].mxu0 }
 0x448   :  { %v693_v52 = vpop.f32.mrb[32].mxu1 }
 0x449   :  { %v883_v53 = vpack.c.bf16 %v693_v52, %v647_v48  ;;  %v1160_v54 = vpop.f32.mrb[33].mxu1 }
 0x44a   :  { %v696_v55 = vpop.f32.mrb[34].mxu1 }
 0x44b   :  { %v1161_v56 = vpop.f32.mrb[35].mxu1  ;;  %1203 = vmatmul.mubr.bf16.vlgmr.msra.gmra.mrb[16].mxu0 %v883_v53 }
 0x44c   :  { %1206 = vmatprep.mubr.msk.bf16.mxu0 %vm1453_vm0, %v1452_v26 }
 0x450   :  { %v739_v57 = vpop.f32.mrb[8].mxu0 }
 0x451   :  { %v1166_v58 = vpop.f32.mrb[9].mxu0 }
 0x452   :  { %v742_v59 = vpop.f32.mrb[10].mxu0 }
 0x453   :  { %v1167_v60 = vpop.f32.mrb[11].mxu0 }
 0x458   :  { %v785_v61 = vpop.f32.mrb[36].mxu1 }
 0x459   :  { %v884_v62 = vpack.c.bf16 %v785_v61, %v739_v57  ;;  %v1172_v63 = vpop.f32.mrb[37].mxu1 }
 0x45a   :  { %v788_v0 = vpop.f32.mrb[38].mxu1 }
 0x45b   :  { %v1173_v1 = vpop.f32.mrb[39].mxu1  ;;  %1207 = vmatmul.mubr.bf16.gmra.mrb[20].mxu0 %v884_v62 }
 0x45c   :  { %1210 = vmatprep.mubr.msk.bf16.mxu0 %vm1453_vm0, %v1452_v26 }
 0x460   :  { %v831_v2 = vpop.f32.mrb[12].mxu0 }
 0x461   :  { %v1178_v3 = vpop.f32.mrb[13].mxu0 }
 0x462   :  { %v834_v4 = vpop.f32.mrb[14].mxu0 }
 0x463   :  { %v1179_v5 = vpop.f32.mrb[15].mxu0 }
 0x468   :  { %v877_v6 = vpop.f32.mrb[40].mxu1 }
 0x469   :  { %v885_v7 = vpack.c.bf16 %v877_v6, %v831_v2  ;;  %v1184_v8 = vpop.f32.mrb[41].mxu1 }
 0x46a   :  { %v880_v9 = vpop.f32.mrb[42].mxu1 }
 0x46b   :  { %v1185_v10 = vpop.f32.mrb[43].mxu1  ;;  %1211 = vmatmul.mubr.bf16.gmra.mrb[24].mxu0 %v885_v7 }
 0x51e   :  { %v991_v11 = vpop.f32.mrb[16].mxu0 }
 0x51f   :  { %v992_v12 = vadd.f32 %v1070_v17, %v991_v11  ;;  %v1204_v13 = vpop.f32.mrb[17].mxu0 }
 0x520   :  { %v994_v14 = vpop.f32.mrb[18].mxu0 }
 0x521   :  { %v1014_v15 = vmax.f32 %v992_v12, 0.0  ;;  %v995_v18 = vadd.f32 %v1070_v17, %v994_v14  ;;  %v1205_v16 = vpop.f32.mrb[19].mxu0 }
 0x523   :  { %1020 = vst [vmem:[#allocation11] sm:$0xff] %v1014_v15  ;;  %v1015_v26 = vmax.f32 %v995_v18, 0.0 }
 0x525   :  { %1021 = vst [vmem:[#allocation11 + $0x8] sm:$0xff] %v1015_v26 }
 0x52e   :  { %v999_v21 = vpop.f32.mrb[20].mxu0 }
 0x52f   :  { %v1000_v22 = vadd.f32 %v1070_v17, %v999_v21  ;;  %v1208_v25 = vpop.f32.mrb[21].mxu0 }
 0x530   :  { %v1002_v27 = vpop.f32.mrb[22].mxu0 }
 0x531   :  { %v1016_v19 = vmax.f32 %v1000_v22, 0.0  ;;  %v1003_v28 = vadd.f32 %v1070_v17, %v1002_v27  ;;  %v1209_v29 = vpop.f32.mrb[23].mxu0 }
 0x533   :  { %1022 = vst [vmem:[#allocation11 + $0x10] sm:$0xff] %v1016_v19  ;;  %v1017_v30 = vmax.f32 %v1003_v28, 0.0 }
 0x535   :  { %1023 = vst [vmem:[#allocation11 + $0x18] sm:$0xff] %v1017_v30 }
 0x53e   :  { %v1007_v31 = vpop.f32.mrb[24].mxu0 }
 0x53f   :  { %v1008_v20 = vadd.f32 %v1070_v17, %v1007_v31  ;;  %v1212_v32 = vpop.f32.mrb[25].mxu0 }
 0x540   :  { %v1010_v33 = vpop.f32.mrb[26].mxu0 }
 0x541   :  { %v1018_v34 = vmax.f32 %v1008_v20, 0.0  ;;  %v1011_v35 = vadd.f32 %v1070_v17, %v1010_v33  ;;  %v1213_v23 = vpop.f32.mrb[27].mxu0 }
 0x543   :  { %1024 = vst [vmem:[#allocation11 + $0x20] sm:$0xff] %v1018_v34  ;;  %v1019_v36 = vmax.f32 %v1011_v35, 0.0 }
 0x545   :  { %1025 = vst [vmem:[#allocation11 + $0x28] sm:$0xff] %v1019_v36 }
 0x546   :  { %1423 = shalt.err (!%p1420_p2)
}
 0x547   :  { %s1424_s11 = scalar_lea.hbm %s1666_s5, 768 }
 0x548   :  { %p1425_p3 = scmp.ne.s32.totalorder %s1666_s5, %s1424_s11  ;;  %p1428_p4 = scmp.lt.u32.totalorder %s1424_s11, %s1666_s5 }
 0x54a   :  { %p1430_p5 = pnand %p1428_p4, %p1425_p3 }
 0x54c   :  { %1433 = shalt.err (!%p1430_p5)
}
 0x54d   :  { %1037 = dma.vmem_to_hbm [thread:$0]  %s1032_s3, 768, %s1666_s5, [#allocation4], %s1443_s28, %s1443_s28, %s1444_s29  }
 0x54e   :  { %1440 = dma.done.wait [#allocation4], 768  }
 0x54f   :  { %1441 = vsyncadd [#allocation4], 4294966528 }
 0x550   :  { %1041 = vsyncpa [#allocation3], 1 }
 0x551   :  { %1042 = vsyncpa [#allocation6], 1 }
 0x552   :  { %1043 = vsyncpa [#allocation9], 1 }
 0x553   :  { %1044 = vsyncpa [#allocation4], 1 }

</bundles_post_ra>
